<compile_context>
chip_gen: v5e
topology: v5e:2x2
jax: 0.10.0
libtpu: 0.0.40
codegen_flags: <defaults>
</compile_context>

<pallas_src>
import jax
import jax.numpy as jnp
from jax.experimental import pallas as pl
from jax.experimental.pallas import tpu as pltpu

HIDDEN_SIZE = 256   # module default hidden_size = 256 (3H = 768, 128-aligned)
INPUT_SIZE = 64     # synthetic vocabulary size
SEQ_LEN = 8         # example encoder sequence length


# ---------------------------------------------------------------------------
# Kernel: one grid step == one GRU timestep; weights resident, hidden in scratch.
# ---------------------------------------------------------------------------
def encoder_gru_kernel(tok_ref,            # SMEM (T,) int32 token ids (scalar prefetch)
                       emb_ref,            # VMEM (1, 1, H) bf16 embedded row for token[t]
                       h0_ref,             # VMEM (1, H) f32 initial hidden (resident)
                       wih_ref,            # VMEM (H, 3H) bf16 W_ih^T (resident)
                       whh_ref,            # VMEM (H, 3H) bf16 W_hh^T (resident)
                       b_rzn_ref,          # VMEM (1, 3H) f32 [b_ih_r+b_hh_r | b_ih_z+b_hh_z | b_ih_n]
                       b_hn_ref,           # VMEM (1, H)  f32 b_hh_n
                       out_ref,            # VMEM (1, 1, H) f32 per-step output
                       h_scratch):         # VMEM (1, H) f32 carried hidden state
    t = pl.program_id(0)

    @pl.when(t == 0)
    def _():
        h_scratch[...] = h0_ref[...].astype(jnp.float32)

    x = emb_ref[0]                  # (1, H) bf16  (embedding(input).view(1, 1, -1))
    h = h_scratch[...]              # (1, H) f32
    H = h.shape[-1]

    # MXU matmuls: bf16 operands, f32 accumulation.
    gi = jnp.dot(x, wih_ref[...], preferred_element_type=jnp.float32)              # (1, 3H)
    gh = jnp.dot(h.astype(jnp.bfloat16), whh_ref[...],
                 preferred_element_type=jnp.float32)                               # (1, 3H)

    s = gi + b_rzn_ref[...]         # fold b_ih (all gates) + b_hh (r, z gates)

    r = jax.nn.sigmoid(s[:, 0:H] + gh[:, 0:H])
    z = jax.nn.sigmoid(s[:, H:2 * H] + gh[:, H:2 * H])
    n = jnp.tanh(s[:, 2 * H:3 * H] + r * (gh[:, 2 * H:3 * H] + b_hn_ref[...]))
    h_new = (1.0 - z) * n + z * h

    h_scratch[...] = h_new
    out_ref[0] = h_new.astype(out_ref.dtype)


# ---------------------------------------------------------------------------
# Fused whole-sequence encoder: equivalent to looping EncoderRNN.forward over
# `tokens`, returning all per-step outputs and the final hidden state.
# ---------------------------------------------------------------------------
def encoder_rnn_pallas(params, tokens, hidden0):
    H = params["w_ih_t"].shape[0]
    T = int(tokens.shape[0])
    h0 = hidden0.reshape(1, H).astype(jnp.float32)

    outputs = pl.pallas_call(
        encoder_gru_kernel,
        out_shape=jax.ShapeDtypeStruct((T, 1, H), jnp.float32),
        grid_spec=pltpu.PrefetchScalarGridSpec(
            num_scalar_prefetch=1,
            grid=(T,),
            in_specs=[
                # embedded token row, gathered via the prefetched token ids
                pl.BlockSpec((1, 1, H), lambda t, tok: (tok[t], 0, 0)),
                # initial hidden state (constant block -> resident)
                pl.BlockSpec((1, H), lambda t, tok: (0, 0)),
                # W_ih^T, W_hh^T (constant blocks -> resident across all steps)
                pl.BlockSpec((H, 3 * H), lambda t, tok: (0, 0)),
                pl.BlockSpec((H, 3 * H), lambda t, tok: (0, 0)),
                # folded biases
                pl.BlockSpec((1, 3 * H), lambda t, tok: (0, 0)),
                pl.BlockSpec((1, H), lambda t, tok: (0, 0)),
            ],
            out_specs=pl.BlockSpec((1, 1, H), lambda t, tok: (t, 0, 0)),
            scratch_shapes=[pltpu.VMEM((1, H), jnp.float32)],
        ),
        compiler_params=pltpu.CompilerParams(
            dimension_semantics=("arbitrary",)),   # recurrence along time
    )(tokens, params["embedding"], h0,
      params["w_ih_t"], params["w_hh_t"], params["b_rzn"], params["b_hn"])

    hidden_out = outputs[T - 1].reshape(1, 1, H)
    return outputs, hidden_out


def encoder_rnn_forward(params, token, hidden):
    """Single-step forward, identical semantics to EncoderRNN.forward(input, hidden).
    Returns (output, hidden), each shaped (1, 1, H)."""
    tokens = jnp.asarray(token, jnp.int32).reshape(1)
    outputs, hidden_out = encoder_rnn_pallas(params, tokens, hidden)
    return outputs.reshape(1, 1, -1), hidden_out


# ---------------------------------------------------------------------------
# Parameters: PyTorch-like init, with transpose / bf16 cast / bias folding
# hoisted out of the forward path (done once here).
# ---------------------------------------------------------------------------
def init_params(key, input_size, hidden_size):
    H = hidden_size
    k_emb, k_wih, k_whh, k_bih, k_bhh = jax.random.split(key, 5)
    bound = 1.0 / jnp.sqrt(jnp.float32(H))

    emb = jax.random.normal(k_emb, (input_size, H), jnp.float32)          # nn.Embedding
    w_ih = jax.random.uniform(k_wih, (3 * H, H), jnp.float32, -bound, bound)
    w_hh = jax.random.uniform(k_whh, (3 * H, H), jnp.float32, -bound, bound)
    b_ih = jax.random.uniform(k_bih, (3 * H,), jnp.float32, -bound, bound)
    b_hh = jax.random.uniform(k_bhh, (3 * H,), jnp.float32, -bound, bound)

    # Pre-fold r/z biases; keep b_ih_n (goes with gi) and b_hh_n (inside r*(...)) apart.
    b_rzn = jnp.concatenate([b_ih[:2 * H] + b_hh[:2 * H], b_ih[2 * H:]]).reshape(1, 3 * H)
    b_hn = b_hh[2 * H:].reshape(1, H)

    return {
        # (V, 1, H) so a per-token (1, 1, H) block satisfies the (8, 128) tiling rule
        "embedding": emb.astype(jnp.bfloat16).reshape(input_size, 1, H),
        "w_ih_t": w_ih.T.astype(jnp.bfloat16),   # (H, 3H)
        "w_hh_t": w_hh.T.astype(jnp.bfloat16),   # (H, 3H)
        "b_rzn": b_rzn,                          # (1, 3H) f32
        "b_hn": b_hn,                            # (1, H)  f32
    }


# ---------------------------------------------------------------------------
# Pure-JAX reference (same bf16 operand rounding, f32 gate math).
# ---------------------------------------------------------------------------
def encoder_rnn_ref(params, tokens, hidden0):
    H = params["w_ih_t"].shape[0]
    wih = params["w_ih_t"].astype(jnp.float32)
    whh = params["w_hh_t"].astype(jnp.float32)
    b_rzn, b_hn = params["b_rzn"], params["b_hn"]
    emb = params["embedding"].reshape(-1, H)

    h = hidden0.reshape(1, H).astype(jnp.float32)
    outs = []
    for t in range(int(tokens.shape[0])):
        x = emb[tokens[t]].reshape(1, H).astype(jnp.float32)
        gi = x @ wih
        gh = h.astype(jnp.bfloat16).astype(jnp.float32) @ whh
        s = gi + b_rzn
        r = jax.nn.sigmoid(s[:, :H] + gh[:, :H])
        z = jax.nn.sigmoid(s[:, H:2 * H] + gh[:, H:2 * H])
        n = jnp.tanh(s[:, 2 * H:] + r * (gh[:, 2 * H:] + b_hn))
        h = (1.0 - z) * n + z * h
        outs.append(h)
    outputs = jnp.stack(outs).reshape(-1, 1, H)
    return outputs, h.reshape(1, 1, H)


if __name__ == "__main__":
    key = jax.random.PRNGKey(0)
    k_params, k_tok = jax.random.split(key, 2)

    params = init_params(k_params, INPUT_SIZE, HIDDEN_SIZE)
    tokens = jax.random.randint(k_tok, (SEQ_LEN,), 0, INPUT_SIZE, dtype=jnp.int32)
    hidden0 = jnp.zeros((1, 1, HIDDEN_SIZE), jnp.float32)   # EncoderRNN.initHidden()

    # Fused whole-sequence encoder run (one pallas_call for all SEQ_LEN steps).
    outputs, hidden = encoder_rnn_pallas(params, tokens, hidden0)

    # Single-step call (exact EncoderRNN.forward signature / semantics).
    out1, h1 = encoder_rnn_forward(params, tokens[0], hidden0)

    jax.block_until_ready((outputs, hidden, out1, h1))

    # Correctness vs pure-JAX reference.
    ref_outputs, ref_hidden = encoder_rnn_ref(params, tokens, hidden0)
    assert outputs.shape == (SEQ_LEN, 1, HIDDEN_SIZE)
    assert hidden.shape == (1, 1, HIDDEN_SIZE)
    assert out1.shape == (1, 1, HIDDEN_SIZE) and h1.shape == (1, 1, HIDDEN_SIZE)
    assert jnp.allclose(outputs, ref_outputs, atol=2e-3, rtol=2e-2)
    assert jnp.allclose(hidden, ref_hidden, atol=2e-3, rtol=2e-2)
    assert jnp.allclose(out1, ref_outputs[0:1], atol=2e-3, rtol=2e-2)
    assert jnp.allclose(h1, ref_outputs[0:1], atol=2e-3, rtol=2e-2)

    print("KERNEL_OK")
</pallas_src>

<mosaic_0001>
module attributes {stable_mosaic.version = 11 : i64} {
  func.func @encoder_gru_kernel(%arg0: i32, %arg1: memref<8xi32, #tpu.memory_space<smem>>, %arg2: memref<1x1x256xbf16, #tpu.memory_space<vmem>>, %arg3: memref<1x256xf32, #tpu.memory_space<vmem>>, %arg4: memref<256x768xbf16, #tpu.memory_space<vmem>>, %arg5: memref<256x768xbf16, #tpu.memory_space<vmem>>, %arg6: memref<1x768xf32, #tpu.memory_space<vmem>>, %arg7: memref<1x256xf32, #tpu.memory_space<vmem>>, %arg8: memref<1x1x256xf32, #tpu.memory_space<vmem>>, %arg9: memref<1x256xf32, #tpu.memory_space<vmem>>) attributes {dimension_semantics = [#tpu.dimension_semantics<arbitrary>], iteration_bounds = array<i64: 8>, scalar_prefetch = 1 : i64, scratch_operands = 1 : i64, tpu.core_type = #tpu.core_type<tc>, window_params = [{transform_indices = @transform_0, window_bounds = array<i64: 1, 1, 256>}, {pipeline_mode = #tpu.pipeline_mode<synchronous>, transform_indices = @transform_1, window_bounds = array<i64: 1, 256>}, {pipeline_mode = #tpu.pipeline_mode<synchronous>, transform_indices = @transform_2, window_bounds = array<i64: 256, 768>}, {pipeline_mode = #tpu.pipeline_mode<synchronous>, transform_indices = @transform_3, window_bounds = array<i64: 256, 768>}, {pipeline_mode = #tpu.pipeline_mode<synchronous>, transform_indices = @transform_4, window_bounds = array<i64: 1, 768>}, {pipeline_mode = #tpu.pipeline_mode<synchronous>, transform_indices = @transform_5, window_bounds = array<i64: 1, 256>}, {transform_indices = @transform_6, window_bounds = array<i64: 1, 1, 256>}]} {
    %c0_i32 = arith.constant 0 : i32
    %0 = arith.cmpi eq, %arg0, %c0_i32 : i32
    %1 = arith.extui %0 : i1 to i32
    %c0_i32_0 = arith.constant 0 : i32
    %2 = arith.cmpi ne, %1, %c0_i32_0 : i32
    scf.if %2 {
      %c0_22 = arith.constant 0 : index
      %c0_23 = arith.constant 0 : index
      %45 = vector.load %arg3[%c0_22, %c0_23] : memref<1x256xf32, #tpu.memory_space<vmem>>, vector<1x256xf32>
      %c0_24 = arith.constant 0 : index
      %c0_25 = arith.constant 0 : index
      %46 = vector.load %arg9[%c0_24, %c0_25] : memref<1x256xf32, #tpu.memory_space<vmem>>, vector<1x256xf32>
      tpu.vector_store %arg9[%c0_24, %c0_25], %45 {strides = array<i32>} : memref<1x256xf32, #tpu.memory_space<vmem>>, vector<1x256xf32>,
    } else {
    }
    %c0 = arith.constant 0 : index
    %c0_1 = arith.constant 0 : index
    %c0_2 = arith.constant 0 : index
    %3 = vector.load %arg2[%c0, %c0_1, %c0_2] : memref<1x1x256xbf16, #tpu.memory_space<vmem>>, vector<1x1x256xbf16>
    %4 = vector.shape_cast %3 : vector<1x1x256xbf16> to vector<1x256xbf16>
    %c0_3 = arith.constant 0 : index
    %c0_4 = arith.constant 0 : index
    %5 = vector.load %arg9[%c0_3, %c0_4] : memref<1x256xf32, #tpu.memory_space<vmem>>, vector<1x256xf32>
    %c0_5 = arith.constant 0 : index
    %c0_6 = arith.constant 0 : index
    %6 = vector.load %arg4[%c0_5, %c0_6] : memref<256x768xbf16, #tpu.memory_space<vmem>>, vector<256x768xbf16>
    %cst = arith.constant dense<0.000000e+00> : vector<1x768xf32>
    %7 = tpu.matmul %4, %6, %cst {dimension_numbers = #tpu.dot_dimension_numbers<[1], [0], [0], [1], [0, 0, 1, 1], [], []>} : vector<1x256xbf16>, vector<256x768xbf16>, vector<1x768xf32> -> vector<1x768xf32>
    %8 = arith.truncf %5 : vector<1x256xf32> to vector<1x256xbf16>
    %c0_7 = arith.constant 0 : index
    %c0_8 = arith.constant 0 : index
    %9 = vector.load %arg5[%c0_7, %c0_8] : memref<256x768xbf16, #tpu.memory_space<vmem>>, vector<256x768xbf16>
    %cst_9 = arith.constant dense<0.000000e+00> : vector<1x768xf32>
    %10 = tpu.matmul %8, %9, %cst_9 {dimension_numbers = #tpu.dot_dimension_numbers<[1], [0], [0], [1], [0, 0, 1, 1], [], []>} : vector<1x256xbf16>, vector<256x768xbf16>, vector<1x768xf32> -> vector<1x768xf32>
    %c0_10 = arith.constant 0 : index
    %c0_11 = arith.constant 0 : index
    %11 = vector.load %arg6[%c0_10, %c0_11] : memref<1x768xf32, #tpu.memory_space<vmem>>, vector<1x768xf32>
    %12 = arith.addf %7, %11 : vector<1x768xf32>
    %13 = vector.extract_strided_slice %12 {offsets = [0, 0], sizes = [1, 256], strides = [1, 1]} : vector<1x768xf32> to vector<1x256xf32>
    %14 = vector.extract_strided_slice %10 {offsets = [0, 0], sizes = [1, 256], strides = [1, 1]} : vector<1x768xf32> to vector<1x256xf32>
    %15 = arith.addf %13, %14 : vector<1x256xf32>
    %16 = arith.negf %15 : vector<1x256xf32>
    %17 = math.exp %16 : vector<1x256xf32>
    %cst_12 = arith.constant 1.000000e+00 : f32
    %18 = vector.broadcast %cst_12 : f32 to vector<1x256xf32>
    %19 = arith.addf %18, %17 : vector<1x256xf32>
    %20 = arith.divf %18, %19 : vector<1x256xf32>
    %21 = vector.extract_strided_slice %12 {offsets = [0, 256], sizes = [1, 256], strides = [1, 1]} : vector<1x768xf32> to vector<1x256xf32>
    %22 = vector.extract_strided_slice %10 {offsets = [0, 256], sizes = [1, 256], strides = [1, 1]} : vector<1x768xf32> to vector<1x256xf32>
    %23 = arith.addf %21, %22 : vector<1x256xf32>
    %24 = arith.negf %23 : vector<1x256xf32>
    %25 = math.exp %24 : vector<1x256xf32>
    %cst_13 = arith.constant 1.000000e+00 : f32
    %26 = vector.broadcast %cst_13 : f32 to vector<1x256xf32>
    %27 = arith.addf %26, %25 : vector<1x256xf32>
    %28 = arith.divf %26, %27 : vector<1x256xf32>
    %29 = vector.extract_strided_slice %12 {offsets = [0, 512], sizes = [1, 256], strides = [1, 1]} : vector<1x768xf32> to vector<1x256xf32>
    %30 = vector.extract_strided_slice %10 {offsets = [0, 512], sizes = [1, 256], strides = [1, 1]} : vector<1x768xf32> to vector<1x256xf32>
    %c0_14 = arith.constant 0 : index
    %c0_15 = arith.constant 0 : index
    %31 = vector.load %arg7[%c0_14, %c0_15] : memref<1x256xf32, #tpu.memory_space<vmem>>, vector<1x256xf32>
    %32 = arith.addf %30, %31 : vector<1x256xf32>
    %33 = arith.mulf %20, %32 : vector<1x256xf32>
    %34 = arith.addf %29, %33 : vector<1x256xf32>
    %35 = math.tanh %34 : vector<1x256xf32>
    %cst_16 = arith.constant 1.000000e+00 : f32
    %36 = vector.broadcast %cst_16 : f32 to vector<1x256xf32>
    %37 = arith.subf %36, %28 : vector<1x256xf32>
    %38 = arith.mulf %37, %35 : vector<1x256xf32>
    %39 = arith.mulf %28, %5 : vector<1x256xf32>
    %40 = arith.addf %38, %39 : vector<1x256xf32>
    %c0_17 = arith.constant 0 : index
    %c0_18 = arith.constant 0 : index
    %41 = vector.load %arg9[%c0_17, %c0_18] : memref<1x256xf32, #tpu.memory_space<vmem>>, vector<1x256xf32>
    tpu.vector_store %arg9[%c0_17, %c0_18], %40 {strides = array<i32>} : memref<1x256xf32, #tpu.memory_space<vmem>>, vector<1x256xf32>,
    %c0_19 = arith.constant 0 : index
    %c0_20 = arith.constant 0 : index
    %c0_21 = arith.constant 0 : index
    %42 = vector.load %arg8[%c0_19, %c0_20, %c0_21] : memref<1x1x256xf32, #tpu.memory_space<vmem>>, vector<1x1x256xf32>
    %43 = vector.shape_cast %42 : vector<1x1x256xf32> to vector<1x256xf32>
    %44 = vector.shape_cast %40 : vector<1x256xf32> to vector<1x1x256xf32>
    tpu.vector_store %arg8[%c0_19, %c0_20, %c0_21], %44 {strides = array<i32>} : memref<1x1x256xf32, #tpu.memory_space<vmem>>, vector<1x1x256xf32>,
    return
  }
  func.func @transform_0(%arg0: i32, %arg1: memref<8xi32, #tpu.memory_space<smem>>) -> (i32, i32, i32) {
    %0 = arith.index_cast %arg0 : i32 to index
    %1 = memref.load %arg1[%0] : memref<8xi32, #tpu.memory_space<smem>>
    %c0_i32 = arith.constant 0 : i32
    %c0_i32_0 = arith.constant 0 : i32
    %c0_i32_1 = arith.constant 0 : i32
    return %1, %c0_i32, %c0_i32_0 : i32, i32, i32
  }
  func.func @transform_1(%arg0: i32, %arg1: memref<8xi32, #tpu.memory_space<smem>>) -> (i32, i32) {
    %c0_i32 = arith.constant 0 : i32
    %c0_i32_0 = arith.constant 0 : i32
    %c0_i32_1 = arith.constant 0 : i32
    return %c0_i32, %c0_i32_0 : i32, i32
  }
  func.func @transform_2(%arg0: i32, %arg1: memref<8xi32, #tpu.memory_space<smem>>) -> (i32, i32) {
    %c0_i32 = arith.constant 0 : i32
    %c0_i32_0 = arith.constant 0 : i32
    %c0_i32_1 = arith.constant 0 : i32
    return %c0_i32, %c0_i32_0 : i32, i32
  }
  func.func @transform_3(%arg0: i32, %arg1: memref<8xi32, #tpu.memory_space<smem>>) -> (i32, i32) {
    %c0_i32 = arith.constant 0 : i32
    %c0_i32_0 = arith.constant 0 : i32
    %c0_i32_1 = arith.constant 0 : i32
    return %c0_i32, %c0_i32_0 : i32, i32
  }
  func.func @transform_4(%arg0: i32, %arg1: memref<8xi32, #tpu.memory_space<smem>>) -> (i32, i32) {
    %c0_i32 = arith.constant 0 : i32
    %c0_i32_0 = arith.constant 0 : i32
    %c0_i32_1 = arith.constant 0 : i32
    return %c0_i32, %c0_i32_0 : i32, i32
  }
  func.func @transform_5(%arg0: i32, %arg1: memref<8xi32, #tpu.memory_space<smem>>) -> (i32, i32) {
    %c0_i32 = arith.constant 0 : i32
    %c0_i32_0 = arith.constant 0 : i32
    %c0_i32_1 = arith.constant 0 : i32
    return %c0_i32, %c0_i32_0 : i32, i32
  }
  func.func @transform_6(%arg0: i32, %arg1: memref<8xi32, #tpu.memory_space<smem>>) -> (i32, i32, i32) {
    %c0_i32 = arith.constant 0 : i32
    %c0_i32_0 = arith.constant 0 : i32
    %c0_i32_1 = arith.constant 0 : i32
    return %arg0, %c0_i32, %c0_i32_0 : i32, i32, i32
  }
}

</mosaic_0001>

<bundles_post_ra>
// kernel: tpu_custom_call.1
= control target key start
LH: loop header
LB: loop body
LE: loop exit
PB: predicated region body
PF: predicated region fallthrough
CT: control target
= control target key end

     0   :  { %s3219_s27 = smov [#allocation4]   ;;  %s3464_s0 = inlined_call_operand.vmem [shape: s32[8], index: 0, kind: input, shape index: {}]   ;;  %s3465_s1 = inlined_call_operand.vmem [shape: bf16[64,1,256], index: 1, kind: input, shape index: {}]   ;;  %s3466_s2 = inlined_call_operand.vmem [shape: f32[1,256], index: 2, kind: input, shape index: {}]   ;;  %s3467_s3 = inlined_call_operand.hbm [shape: bf16[256,768], index: 3, kind: input, shape index: {}]   ;;  %s3468_s4 = inlined_call_operand.hbm [shape: bf16[256,768], index: 4, kind: input, shape index: {}]   ;;  %s3469_s5 = inlined_call_operand.vmem [shape: f32[1,768], index: 5, kind: input, shape index: {}]   ;;  %s3470_s6 = inlined_call_operand.vmem [shape: f32[1,256], index: 6, kind: input, shape index: {}]   ;;  %s3471_s7 = inlined_call_operand.hbm [shape: f32[8,1,256], index: 7, kind: output, shape index: {}]  }
   0x1   :  { %s13_s26 = sshll.u32 %s3464_s0, 4  ;;  %s14_s26 = int_to_ptr.vmem [resolvable:$true] %s13_s26 }
   0x2   :  { %16 = dma.vmem_to_smem %s14_s26, 16, %s3219_s27, [#allocation3] }
   0x3   :  { %3189 = dma.done.wait [#allocation3], 16 }
   0x4   :  { %3190 = vsyncadd [#allocation3], 4294967280 }
   0x5   :  { %19 = sfence }
   0x6   :  { %20 = vsyncpa [#allocation6], 0 }
   0x7   :  { %21 = vsyncpa [#allocation9], 0 }
   0x8   :  { %22 = vsyncpa [#allocation7], 0 }
   0x9   :  { %24 = vsyncpa [#allocation7 + $0x1], 0  ;;  %s3267_s28 = smov 0   ;;  %s3269_s29 = smov 0  }
   0xa   :  { %s3271_s30 = smov 0   ;;  %s3273_s8 = smov 0  }
   0xb LB: > { %s3288_s0 = sadd.s32 4294967295, %s3217_s8   ;;  %s2011_s9 = sadd.s32 4294967294, %s3217_s8   ;;  %s3217_s8 = sphi %s3273_s8, %s3478_s8   ;;  %s3213_s30 = sphi %s3271_s30, %s3477_s30   ;;  %s3209_s29 = sphi %s3269_s29, %s3476_s29   ;;  %s3205_s28 = sphi %s3267_s28, %s3475_s28  }
   0xc   : > { %s3292_s10 = sadd.s32 1, %s3217_s8   ;;  %s170_s11 = sadd.s32 1, %s3213_s30 }
   0xd   : > { %s167_s12 = ssub.s32 %s3217_s8, %s3292_s10  ;;  %p180_p0 = scmp.ne.s32.totalorder %s3213_s30, %s3209_s29 }
   0xe   : > { %p168_p1 = scmp.eq.s32.totalorder %s167_s12, 0  ;;  %p181_p2 = scmp.eq.s32.totalorder %s3288_s0, 7 }
   0xf   : > { %p186_p3 = scmp.ne.s32.totalorder %s3209_s29, %s3205_s28  ;;  %p187_p4 = scmp.eq.s32.totalorder %s2011_s9, 7 }
  0x10   : > { %s3303_s13 = scalar_select %p168_p1, %s3213_s30, %s170_s11  }
  0x11   : > { %p3305_p5 = por %p181_p2, %p180_p0  ;;  %p3309_p6 = por %p187_p4, %p186_p3 }
  0x12   : > { %p2012_p7 = scmp.ge.s32.totalorder %s3217_s8, 1  ;;  %p194_p8 = scmp.lt.s32.totalorder %s3217_s8, 9 }
  0x13   : > { %p2013_p9 = scmp.ne.s32.totalorder %s3288_s0, 0  ;;  %p3011_p10 = scmp.eq.s32.totalorder %s3288_s0, 0 }
  0x14   : > { %p3317_p11 = pnand %p2012_p7, %p194_p8  ;;  %s208_s19 = sshll.u32 %s3467_s3, 4  ;;  %s209_s19 = int_to_ptr.hbm [resolvable:$true] %s208_s19 }
  0x15   : > { %s3220_s20 = smov [#allocation5]   ;;  %s222_s24 = sshll.u32 %s3468_s4, 4  ;;  %s223_s24 = int_to_ptr.hbm [resolvable:$true] %s222_s24 }
  0x16   : > { %p3000_p12 = pneg %p3317_p11  ;;  %s210_s21 = sshll.u32 %s3220_s20, 4  ;;  %s211_s21 = int_to_ptr.vmem [resolvable:$true] %s210_s21 }
  0x17   : > { %s3221_s25 = smov 384   ;;  %s3222_s26 = smov 24  }
  0x18   : > { %p3001_p13 = pnand %p3011_p10, %p3000_p12  ;;  %s3223_s27 = smov [#allocation8]  }
  0x19   : > { %s224_s9 = sshll.u32 %s3223_s27, 4  ;;  %255 = sbr.rel (%p3317_p11) target bundleno = 399 (0x18f), region = 44  ;;  %s225_s9 = int_to_ptr.vmem [resolvable:$true] %s224_s9 }
  0x1a   : > { %3003 = dma.hbm_to_vmem [thread:$0]  (!%p3001_p13), %s209_s19, 12288, %s211_s21, [#allocation6], %s3221_s25, %s3221_s25, %s3222_s26  }
  0x1b   : > { %3006 = dma.hbm_to_vmem [thread:$0]  (!%p3001_p13), %s223_s24, 12288, %s225_s9, [#allocation9], %s3221_s25, %s3221_s25, %s3222_s26  }
  0x1e   : > { %3192 = dma.done.wait (%p3011_p10), [#allocation6], 12288  }
  0x1f   : > { %3194 = vsyncadd (%p3011_p10), [#allocation6], 4294955008 }
  0x20   : > { %3196 = dma.done.wait (%p3011_p10), [#allocation9], 12288  }
  0x21   : > { %3198 = vsyncadd (%p3011_p10), [#allocation9], 4294955008  ;;  %s288_s11 = sand.u32 1, %s3209_s29   ;;  %s291_s12 = sld [smem:[#allocation4 + %s3288_s0]] }
  0x22   : > { %s3345_s16 = sshll.u32 %s288_s11, 1 }
  0x23   : > { %s290_s21 = scalar_lea.vmem [#allocation10], %s3345_s16 }
  0x27   : > { %p292_p0 = scmp.lt.s32.totalorder %s291_s12, 63  ;;  %300 = sbr.rel (%p2013_p9) target bundleno = 48 (0x30), region = 56 }
  0x29   : > { %s3480_s12 = smov (!%p292_p0, %s291_s12), 63 }
  0x2a   : > { %s2020_s17 = sshll.u32 %s3480_s12, 1 }
  0x2b   : > { %s3350_s20 = scalar_lea.vmem %s3465_s1, %s2020_s17 }
  0x2c   : > { %v301_v0 = vld [vmem:[%s3466_s2] sm:$0x3]  ;;  %v302_v1 = vlaneseq }
  0x2e   : > { %vm304_vm0 = vcmp.lt.s32.totalorder %v302_v1, 256 }
  0x2f   : > { %306 = vst.msk [vmem:[#allocation2] sm:$0x3] %vm304_vm0, %v301_v0 }
  0x30 PF: > { %v2192_v2 = vld [vmem:[#allocation8 + $0x150] sm:$0xf]  ;;  %v2939_v3 = vld [vmem:[#allocation8 + $0x164] sm:$0xf0]  ;;  %v2936_v4 = vld [vmem:[#allocation8 + $0x154] sm:$0xf] }
  0x31   : > { %v2193_v5 = vor.u32 %v2939_v3, %v2192_v2  ;;  %v2194_v6 = vld [vmem:[#allocation8 + $0x168] sm:$0xf0]  ;;  %v2984_v7 = vld [vmem:[#allocation8 + $0x2d4] sm:$0xf]  ;;  %v2384_v11 = vld [vmem:[#allocation8 + $0x2d0] sm:$0xf] }
  0x32   : > { %v2386_v8 = vld [vmem:[#allocation8 + $0x2e8] sm:$0xf0]  ;;  %v2197_v9 = vor.u32 %v2936_v4, %v2194_v6  ;;  %v2987_v12 = vld [vmem:[#allocation8 + $0x2e4] sm:$0xf0]  ;;  %v2168_v13 = vld [vmem:[#allocation8 + $0x120] sm:$0xf] }
  0x33   : > { %v2389_v10 = vor.u32 %v2984_v7, %v2386_v8  ;;  %988 = vmatpush.bf16.msra.mxu0 %v2193_v5  ;;  %v2385_v14 = vor.u32 %v2987_v12, %v2384_v11  ;;  %v2933_v15 = vld [vmem:[#allocation8 + $0x134] sm:$0xf0]  ;;  %v2930_v16 = vld [vmem:[#allocation8 + $0x124] sm:$0xf]  ;;  %v2170_v17 = vld [vmem:[#allocation8 + $0x138] sm:$0xf0] }
  0x34   : > { %1014 = vmatpush.bf16.msra.mxu2 %v2197_v9  ;;  %v2169_v18 = vor.u32 %v2933_v15, %v2168_v13  ;;  %v2173_v19 = vor.u32 %v2930_v16, %v2170_v17  ;;  %v2978_v20 = vld [vmem:[#allocation8 + $0x2a4] sm:$0xf]  ;;  %v2362_v21 = vld [vmem:[#allocation8 + $0x2b8] sm:$0xf0]  ;;  %v2360_v22 = vld [vmem:[#allocation8 + $0x2a0] sm:$0xf] }
  0x35   : > { %1027 = vmatpush.bf16.msra.mxu3 %v2389_v10  ;;  %1001 = vmatpush.bf16.msra.mxu1 %v2385_v14  ;;  %v2365_v23 = vor.u32 %v2978_v20, %v2362_v21  ;;  %v2981_v24 = vld [vmem:[#allocation8 + $0x2b4] sm:$0xf0]  ;;  %v2144_v25 = vld [vmem:[#allocation8 + $0xf0] sm:$0xf]  ;;  %v2927_v26 = vld [vmem:[#allocation8 + $0x104] sm:$0xf0] }
  0x36   : > { %v2361_v27 = vor.u32 %v2981_v24, %v2360_v22  ;;  %v2924_v28 = vld [vmem:[#allocation8 + $0xf4] sm:$0xf]  ;;  %v2146_v29 = vld [vmem:[#allocation8 + $0x108] sm:$0xf0]  ;;  %v2145_v31 = vor.u32 %v2927_v26, %v2144_v25  ;;  %v2336_v33 = vld [vmem:[#allocation8 + $0x270] sm:$0xf] }
  0x37   : > { %v2972_v30 = vld [vmem:[#allocation8 + $0x274] sm:$0xf]  ;;  %989 = vmatpush.bf16.msra.mxu0 %v2169_v18  ;;  %v2338_v32 = vld [vmem:[#allocation8 + $0x288] sm:$0xf0]  ;;  %v2975_v34 = vld [vmem:[#allocation8 + $0x284] sm:$0xf0]  ;;  %v2149_v35 = vor.u32 %v2924_v28, %v2146_v29 }
  0x38   : > { %1015 = vmatpush.bf16.msra.mxu2 %v2173_v19  ;;  %v2341_v36 = vor.u32 %v2972_v30, %v2338_v32  ;;  %v2120_v37 = vld [vmem:[#allocation8 + $0xc0] sm:$0xf]  ;;  %v2921_v38 = vld [vmem:[#allocation8 + $0xd4] sm:$0xf0]  ;;  %v2918_v39 = vld [vmem:[#allocation8 + $0xc4] sm:$0xf]  ;;  %v2337_v40 = vor.u32 %v2975_v34, %v2336_v33 }
  0x39   : > { %1028 = vmatpush.bf16.msra.mxu3 %v2365_v23  ;;  %1002 = vmatpush.bf16.msra.mxu1 %v2361_v27  ;;  %v2122_v41 = vld [vmem:[#allocation8 + $0xd8] sm:$0xf0]  ;;  %v2966_v42 = vld [vmem:[#allocation8 + $0x244] sm:$0xf]  ;;  %v2312_v44 = vld [vmem:[#allocation8 + $0x240] sm:$0xf]  ;;  %v2121_v46 = vor.u32 %v2921_v38, %v2120_v37 }
  0x3a   : > { %v2314_v43 = vld [vmem:[#allocation8 + $0x258] sm:$0xf0]  ;;  %v2969_v45 = vld [vmem:[#allocation8 + $0x254] sm:$0xf0]  ;;  %v2125_v47 = vor.u32 %v2918_v39, %v2122_v41  ;;  %v2096_v49 = vld [vmem:[#allocation8 + $0x90] sm:$0xf] }
  0x3b   : > { %990 = vmatpush.bf16.msra.mxu0 %v2145_v31  ;;  %v2317_v48 = vor.u32 %v2966_v42, %v2314_v43  ;;  %v2915_v50 = vld [vmem:[#allocation8 + $0xa4] sm:$0xf0]  ;;  %v2912_v51 = vld [vmem:[#allocation8 + $0x94] sm:$0xf]  ;;  %v2313_v52 = vor.u32 %v2969_v45, %v2312_v44  ;;  %v2098_v53 = vld [vmem:[#allocation8 + $0xa8] sm:$0xf0] }
  0x3c   : > { %1016 = vmatpush.bf16.msra.mxu2 %v2149_v35  ;;  %v2960_v54 = vld [vmem:[#allocation8 + $0x214] sm:$0xf]  ;;  %v2290_v55 = vld [vmem:[#allocation8 + $0x228] sm:$0xf0]  ;;  %v2288_v56 = vld [vmem:[#allocation8 + $0x210] sm:$0xf]  ;;  %v2097_v58 = vor.u32 %v2915_v50, %v2096_v49  ;;  %v2101_v59 = vor.u32 %v2912_v51, %v2098_v53 }
  0x3d   : > { %1029 = vmatpush.bf16.msra.mxu3 %v2341_v36  ;;  %1003 = vmatpush.bf16.msra.mxu1 %v2337_v40  ;;  %v2963_v57 = vld [vmem:[#allocation8 + $0x224] sm:$0xf0]  ;;  %v2293_v60 = vor.u32 %v2960_v54, %v2290_v55  ;;  %v2072_v61 = vld [vmem:[#allocation8 + $0x60] sm:$0xf]  ;;  %v2909_v62 = vld [vmem:[#allocation8 + $0x74] sm:$0xf0] }
  0x3e   : > { %v2906_v63 = vld [vmem:[#allocation8 + $0x64] sm:$0xf]  ;;  %v2289_v0 = vor.u32 %v2963_v57, %v2288_v56  ;;  %v2074_v1 = vld [vmem:[#allocation8 + $0x78] sm:$0xf0]  ;;  %v2264_v4 = vld [vmem:[#allocation8 + $0x1e0] sm:$0xf]  ;;  %v2073_v6 = vor.u32 %v2909_v62, %v2072_v61 }
  0x3f   : > { %991 = vmatpush.bf16.msra.mxu0 %v2121_v46  ;;  %v2954_v2 = vld [vmem:[#allocation8 + $0x1e4] sm:$0xf]  ;;  %v2266_v3 = vld [vmem:[#allocation8 + $0x1f8] sm:$0xf0]  ;;  %v2957_v5 = vld [vmem:[#allocation8 + $0x1f4] sm:$0xf0]  ;;  %v2077_v7 = vor.u32 %v2906_v63, %v2074_v1 }
  0x40   : > { %1017 = vmatpush.bf16.msra.mxu2 %v2125_v47  ;;  %v2269_v8 = vor.u32 %v2954_v2, %v2266_v3  ;;  %v2048_v9 = vld [vmem:[#allocation8 + $0x30] sm:$0xf]  ;;  %v2903_v10 = vld [vmem:[#allocation8 + $0x44] sm:$0xf0]  ;;  %v2900_v11 = vld [vmem:[#allocation8 + $0x34] sm:$0xf]  ;;  %v2265_v12 = vor.u32 %v2957_v5, %v2264_v4 }
  0x41   : > { %1030 = vmatpush.bf16.msra.mxu3 %v2317_v48  ;;  %1004 = vmatpush.bf16.msra.mxu1 %v2313_v52  ;;  %v2050_v13 = vld [vmem:[#allocation8 + $0x48] sm:$0xf0]  ;;  %v2948_v14 = vld [vmem:[#allocation8 + $0x1b4] sm:$0xf]  ;;  %v2240_v16 = vld [vmem:[#allocation8 + $0x1b0] sm:$0xf]  ;;  %v2049_v18 = vor.u32 %v2903_v10, %v2048_v9 }
  0x42   : > { %v2242_v15 = vld [vmem:[#allocation8 + $0x1c8] sm:$0xf0]  ;;  %v2951_v17 = vld [vmem:[#allocation8 + $0x1c4] sm:$0xf0]  ;;  %v2024_v19 = vld [vmem:[#allocation8] sm:$0xf]  ;;  %v2053_v21 = vor.u32 %v2900_v11, %v2050_v13 }
  0x43   : > { %992 = vmatpush.bf16.msra.mxu0 %v2097_v58  ;;  %v2897_v20 = vld [vmem:[#allocation8 + $0x14] sm:$0xf0]  ;;  %v2245_v22 = vor.u32 %v2948_v14, %v2242_v15  ;;  %v2894_v23 = vld [vmem:[#allocation8 + $0x4] sm:$0xf]  ;;  %v2026_v24 = vld [vmem:[#allocation8 + $0x18] sm:$0xf0]  ;;  %v2241_v26 = vor.u32 %v2951_v17, %v2240_v16 }
  0x44   : > { %1018 = vmatpush.bf16.msra.mxu2 %v2101_v59  ;;  %v2942_v25 = vld [vmem:[#allocation8 + $0x184] sm:$0xf]  ;;  %v2218_v27 = vld [vmem:[#allocation8 + $0x198] sm:$0xf0]  ;;  %v2200_v28 = vld [vmem:[#allocation8 + $0x158] sm:$0xf]  ;;  %v2025_v33 = vor.u32 %v2897_v20, %v2024_v19  ;;  %v2029_v37 = vor.u32 %v2894_v23, %v2026_v24 }
  0x45   : > { %1031 = vmatpush.bf16.msra.mxu3 %v2293_v60  ;;  %1005 = vmatpush.bf16.msra.mxu1 %v2289_v0  ;;  %v2940_v29 = vld [vmem:[#allocation8 + $0x16c] sm:$0xf0]  ;;  %v2937_v30 = vld [vmem:[#allocation8 + $0x15c] sm:$0xf]  ;;  %v2202_v31 = vld [vmem:[#allocation8 + $0x170] sm:$0xf0]  ;;  %v2221_v38 = vor.u32 %v2942_v25, %v2218_v27 }
  0x46   : > { %v2985_v32 = vld [vmem:[#allocation8 + $0x2dc] sm:$0xf]  ;;  %v2394_v34 = vld [vmem:[#allocation8 + $0x2f0] sm:$0xf0]  ;;  %v2216_v35 = vld [vmem:[#allocation8 + $0x180] sm:$0xf]  ;;  %v2201_v41 = vor.u32 %v2940_v29, %v2200_v28  ;;  %v2205_v42 = vor.u32 %v2937_v30, %v2202_v31 }
  0x47   : > { %993 = vmatpush.bf16.msra.mxu0 %v2073_v6  ;;  %v2945_v36 = vld [vmem:[#allocation8 + $0x194] sm:$0xf0]  ;;  %v2988_v40 = vld [vmem:[#allocation8 + $0x2ec] sm:$0xf0]  ;;  %v2176_v43 = vld [vmem:[#allocation8 + $0x128] sm:$0xf]  ;;  %v2397_v44 = vor.u32 %v2985_v32, %v2394_v34 }
  0x48   : > { %1019 = vmatpush.bf16.msra.mxu2 %v2077_v7  ;;  %v2392_v39 = vld [vmem:[#allocation8 + $0x2d8] sm:$0xf]  ;;  %v2217_v45 = vor.u32 %v2945_v36, %v2216_v35  ;;  %v2934_v46 = vld [vmem:[#allocation8 + $0x13c] sm:$0xf0]  ;;  %v2931_v47 = vld [vmem:[#allocation8 + $0x12c] sm:$0xf] }
  0x49   : > { %1032 = vmatpush.bf16.msra.mxu3 %v2269_v8  ;;  %1006 = vmatpush.bf16.msra.mxu1 %v2265_v12  ;;  %v2178_v48 = vld [vmem:[#allocation8 + $0x140] sm:$0xf0]  ;;  %v2393_v49 = vor.u32 %v2988_v40, %v2392_v39  ;;  %v2979_v50 = vld [vmem:[#allocation8 + $0x2ac] sm:$0xf]  ;;  %v2368_v52 = vld [vmem:[#allocation8 + $0x2a8] sm:$0xf]  ;;  %v2177_v54 = vor.u32 %v2934_v46, %v2176_v43 }
  0x4a   : > { %v2370_v51 = vld [vmem:[#allocation8 + $0x2c0] sm:$0xf0]  ;;  %v2982_v53 = vld [vmem:[#allocation8 + $0x2bc] sm:$0xf0]  ;;  %v2181_v55 = vor.u32 %v2931_v47, %v2178_v48  ;;  %v2152_v56 = vld [vmem:[#allocation8 + $0xf8] sm:$0xf] }
  0x4b   : > { %994 = vmatpush.bf16.msra.mxu0 %v2049_v18  ;;  %v2373_v57 = vor.u32 %v2979_v50, %v2370_v51  ;;  %v2928_v58 = vld [vmem:[#allocation8 + $0x10c] sm:$0xf0]  ;;  %v2925_v59 = vld [vmem:[#allocation8 + $0xfc] sm:$0xf]  ;;  %v2154_v60 = vld [vmem:[#allocation8 + $0x110] sm:$0xf0]  ;;  %v2369_v61 = vor.u32 %v2982_v53, %v2368_v52 }
  0x4c   : > { %1020 = vmatpush.bf16.msra.mxu2 %v2053_v21  ;;  %v2973_v62 = vld [vmem:[#allocation8 + $0x27c] sm:$0xf]  ;;  %v2346_v63 = vld [vmem:[#allocation8 + $0x290] sm:$0xf0]  ;;  %v2344_v0 = vld [vmem:[#allocation8 + $0x278] sm:$0xf]  ;;  %v2153_v3 = vor.u32 %v2928_v58, %v2152_v56  ;;  %v2157_v4 = vor.u32 %v2925_v59, %v2154_v60 }
  0x4d   : > { %1033 = vmatpush.bf16.msra.mxu3 %v2245_v22  ;;  %1007 = vmatpush.bf16.msra.mxu1 %v2241_v26  ;;  %v2976_v1 = vld [vmem:[#allocation8 + $0x28c] sm:$0xf0]  ;;  %v308_v2 = vld [vmem:[#allocation2] sm:$0x3]  ;;  %v2128_v5 = vld [vmem:[#allocation8 + $0xc8] sm:$0xf]  ;;  %v2349_v8 = vor.u32 %v2973_v62, %v2346_v63 }
  0x4e   : > { %v3358_v6 = vperm.slane %v308_v2, 0  ;;  %v3360_v7 = vperm.slane %v308_v2, 1  ;;  %v2922_v9 = vld [vmem:[#allocation8 + $0xdc] sm:$0xf0]  ;;  %v2919_v10 = vld [vmem:[#allocation8 + $0xcc] sm:$0xf]  ;;  %v2345_v12 = vor.u32 %v2976_v1, %v2344_v0 }
  0x4f   : > { %995 = vmatpush.bf16.msra.mxu0 %v2025_v33  ;;  %v2130_v11 = vld [vmem:[#allocation8 + $0xe0] sm:$0xf0]  ;;  %v2967_v13 = vld [vmem:[#allocation8 + $0x24c] sm:$0xf]  ;;  %v2320_v17 = vld [vmem:[#allocation8 + $0x248] sm:$0xf]  ;;  %v2129_v19 = vor.u32 %v2922_v9, %v2128_v5 }
  0x50   : > { %1021 = vmatpush.bf16.msra.mxu2 %v2029_v37  ;;  %v2322_v14 = vld [vmem:[#allocation8 + $0x260] sm:$0xf0]  ;;  %v3364_v15 = vpack.c.bf16 %v3358_v6, %v3358_v6  ;;  %v3368_v16 = vpack.c.bf16 %v3360_v7, %v3360_v7  ;;  %v2970_v18 = vld [vmem:[#allocation8 + $0x25c] sm:$0xf0]  ;;  %v2133_v20 = vor.u32 %v2919_v10, %v2130_v11  ;;  %v2104_v21 = vld [vmem:[#allocation8 + $0x98] sm:$0xf] }
  0x51   : > { %1034 = vmatpush.bf16.msra.mxu3 %v2221_v38  ;;  %1008 = vmatpush.bf16.msra.mxu1 %v2217_v45  ;;  %v2325_v22 = vor.u32 %v2967_v13, %v2322_v14  ;;  %v2916_v23 = vld [vmem:[#allocation8 + $0xac] sm:$0xf0]  ;;  %v2913_v24 = vld [vmem:[#allocation8 + $0x9c] sm:$0xf]  ;;  %v2106_v25 = vld [vmem:[#allocation8 + $0xb0] sm:$0xf0]  ;;  %v2321_v26 = vor.u32 %v2970_v18, %v2320_v17 }
  0x52   : > { %v2961_v27 = vld [vmem:[#allocation8 + $0x21c] sm:$0xf]  ;;  %v2298_v28 = vld [vmem:[#allocation8 + $0x230] sm:$0xf0]  ;;  %v2296_v29 = vld [vmem:[#allocation8 + $0x218] sm:$0xf]  ;;  %996 = vmatmul.bf16.vlgmr.msra.gmra.mxu0 %v3364_v15  ;;  %v2105_v31 = vor.u32 %v2916_v23, %v2104_v21  ;;  %v2109_v32 = vor.u32 %v2913_v24, %v2106_v25 }
  0x53   : > { %1040 = vmatpush.bf16.msrb.mxu0 %v2201_v41  ;;  %1022 = vmatmul.bf16.vlgmr.msra.gmra.mxu2 %v3364_v15  ;;  %v2964_v30 = vld [vmem:[#allocation8 + $0x22c] sm:$0xf0]  ;;  %v2080_v33 = vld [vmem:[#allocation8 + $0x68] sm:$0xf]  ;;  %v2301_v34 = vor.u32 %v2961_v27, %v2298_v28  ;;  %v2910_v35 = vld [vmem:[#allocation8 + $0x7c] sm:$0xf0] }
  0x54   : > { %1066 = vmatpush.bf16.msrb.mxu2 %v2205_v42  ;;  %1035 = vmatmul.bf16.vlgmr.msra.gmra.mxu3 %v3368_v16  ;;  %v2907_v36 = vld [vmem:[#allocation8 + $0x6c] sm:$0xf]  ;;  %v2082_v37 = vld [vmem:[#allocation8 + $0x80] sm:$0xf0]  ;;  %v2297_v38 = vor.u32 %v2964_v30, %v2296_v29  ;;  %v2272_v41 = vld [vmem:[#allocation8 + $0x1e8] sm:$0xf]  ;;  %v2081_v43 = vor.u32 %v2910_v35, %v2080_v33 }
  0x55   : > { %1079 = vmatpush.bf16.msrb.mxu3 %v2397_v44  ;;  %1053 = vmatpush.bf16.msrb.mxu1 %v2393_v49  ;;  %v2955_v39 = vld [vmem:[#allocation8 + $0x1ec] sm:$0xf]  ;;  %v2274_v40 = vld [vmem:[#allocation8 + $0x200] sm:$0xf0]  ;;  %v2958_v42 = vld [vmem:[#allocation8 + $0x1fc] sm:$0xf0]  ;;  %v2085_v44 = vor.u32 %v2907_v36, %v2082_v37 }
  0x56   : > { %1009 = vmatmul.bf16.vlgmr.msra.gmra.mxu1 %v3368_v16  ;;  %v2056_v45 = vld [vmem:[#allocation8 + $0x38] sm:$0xf]  ;;  %v2277_v46 = vor.u32 %v2955_v39, %v2274_v40  ;;  %v2904_v47 = vld [vmem:[#allocation8 + $0x4c] sm:$0xf0]  ;;  %v2901_v48 = vld [vmem:[#allocation8 + $0x3c] sm:$0xf]  ;;  %v2273_v50 = vor.u32 %v2958_v42, %v2272_v41 }
  0x57   : > { %1041 = vmatpush.bf16.msrb.mxu0 %v2177_v54  ;;  %v2058_v49 = vld [vmem:[#allocation8 + $0x50] sm:$0xf0]  ;;  %v2949_v51 = vld [vmem:[#allocation8 + $0x1bc] sm:$0xf]  ;;  %v2248_v53 = vld [vmem:[#allocation8 + $0x1b8] sm:$0xf] }
  0x58   : > { %1067 = vmatpush.bf16.msrb.mxu2 %v2181_v55  ;;  %v2250_v52 = vld [vmem:[#allocation8 + $0x1d0] sm:$0xf0]  ;;  %v2952_v54 = vld [vmem:[#allocation8 + $0x1cc] sm:$0xf0]  ;;  %v2057_v55 = vor.u32 %v2904_v47, %v2056_v45  ;;  %v2061_v56 = vor.u32 %v2901_v48, %v2058_v49  ;;  %v2898_v58 = vld [vmem:[#allocation8 + $0x1c] sm:$0xf0] }
  0x59   : > { %1080 = vmatpush.bf16.msrb.mxu3 %v2373_v57  ;;  %1054 = vmatpush.bf16.msrb.mxu1 %v2369_v61  ;;  %v2032_v57 = vld [vmem:[#allocation8 + $0x8] sm:$0xf]  ;;  %v2895_v59 = vld [vmem:[#allocation8 + $0xc] sm:$0xf]  ;;  %v2253_v60 = vor.u32 %v2949_v51, %v2250_v52  ;;  %v2034_v61 = vld [vmem:[#allocation8 + $0x20] sm:$0xf0]  ;;  %v2249_v0 = vor.u32 %v2952_v54, %v2248_v53 }
  0x5a   : > { %v2943_v62 = vld [vmem:[#allocation8 + $0x18c] sm:$0xf]  ;;  %v2226_v63 = vld [vmem:[#allocation8 + $0x1a0] sm:$0xf0]  ;;  %v2208_v1 = vld [vmem:[#allocation8 + $0x160] sm:$0xf]  ;;  %v2033_v9 = vor.u32 %v2898_v58, %v2032_v57  ;;  %v2037_v10 = vor.u32 %v2895_v59, %v2034_v61 }
  0x5b   : > { %1042 = vmatpush.bf16.msrb.mxu0 %v2153_v3  ;;  %v2941_v2 = vld [vmem:[#allocation8 + $0x174] sm:$0xf0]  ;;  %v2938_v3 = vld [vmem:[#allocation8 + $0x164] sm:$0xf]  ;;  %v2224_v11 = vld [vmem:[#allocation8 + $0x188] sm:$0xf]  ;;  %v2229_v13 = vor.u32 %v2943_v62, %v2226_v63 }
  0x5c   : > { %1068 = vmatpush.bf16.msrb.mxu2 %v2157_v4  ;;  %v2210_v4 = vld [vmem:[#allocation8 + $0x178] sm:$0xf0]  ;;  %v2986_v5 = vld [vmem:[#allocation8 + $0x2e4] sm:$0xf]  ;;  %v2209_v14 = vor.u32 %v2941_v2, %v2208_v1  ;;  %v2400_v17 = vld [vmem:[#allocation8 + $0x2e0] sm:$0xf] }
  0x5d   : > { %1081 = vmatpush.bf16.msrb.mxu3 %v2349_v8  ;;  %1055 = vmatpush.bf16.msrb.mxu1 %v2345_v12  ;;  %v2402_v8 = vld [vmem:[#allocation8 + $0x2f8] sm:$0xf0]  ;;  %v2946_v12 = vld [vmem:[#allocation8 + $0x19c] sm:$0xf0]  ;;  %v2989_v18 = vld [vmem:[#allocation8 + $0x2f4] sm:$0xf0] }
  0x5e   : > { %v2184_v21 = vld [vmem:[#allocation8 + $0x130] sm:$0xf]  ;;  %v2932_v23 = vld [vmem:[#allocation8 + $0x134] sm:$0xf]  ;;  %v2225_v24 = vor.u32 %v2946_v12, %v2224_v11  ;;  %v2186_v25 = vld [vmem:[#allocation8 + $0x148] sm:$0xf0]  ;;  %v2401_v28 = vor.u32 %v2989_v18, %v2400_v17 }
  0x5f   : > { %1043 = vmatpush.bf16.msrb.mxu0 %v2129_v19  ;;  %v2213_v19 = vor.u32 %v2938_v3, %v2210_v4  ;;  %v2378_v27 = vld [vmem:[#allocation8 + $0x2c8] sm:$0xf0]  ;;  %v2376_v30 = vld [vmem:[#allocation8 + $0x2b0] sm:$0xf]  ;;  %v2929_v35 = vld [vmem:[#allocation8 + $0x114] sm:$0xf0] }
  0x60   : > { %1069 = vmatpush.bf16.msrb.mxu2 %v2133_v20  ;;  %v2405_v20 = vor.u32 %v2986_v5, %v2402_v8  ;;  %v2926_v36 = vld [vmem:[#allocation8 + $0x104] sm:$0xf]  ;;  %v2162_v37 = vld [vmem:[#allocation8 + $0x118] sm:$0xf0]  ;;  %v2352_v42 = vld [vmem:[#allocation8 + $0x280] sm:$0xf] }
  0x61   : > { %1082 = vmatpush.bf16.msrb.mxu3 %v2325_v22  ;;  %1056 = vmatpush.bf16.msrb.mxu1 %v2321_v26  ;;  %v2935_v22 = vld [vmem:[#allocation8 + $0x144] sm:$0xf0]  ;;  %v2980_v26 = vld [vmem:[#allocation8 + $0x2b4] sm:$0xf]  ;;  %v2354_v39 = vld [vmem:[#allocation8 + $0x298] sm:$0xf0] }
  0x62   : > { %v2185_v29 = vor.u32 %v2935_v22, %v2184_v21  ;;  %v2381_v33 = vor.u32 %v2980_v26, %v2378_v27  ;;  %v2923_v47 = vld [vmem:[#allocation8 + $0xe4] sm:$0xf0]  ;;  %v2920_v48 = vld [vmem:[#allocation8 + $0xd4] sm:$0xf]  ;;  %v2138_v49 = vld [vmem:[#allocation8 + $0xe8] sm:$0xf0] }
  0x63   : > { %1044 = vmatpush.bf16.msrb.mxu0 %v2105_v31  ;;  %v2983_v31 = vld [vmem:[#allocation8 + $0x2c4] sm:$0xf0]  ;;  %v2330_v51 = vld [vmem:[#allocation8 + $0x268] sm:$0xf0]  ;;  %v2328_v54 = vld [vmem:[#allocation8 + $0x250] sm:$0xf] }
  0x64   : > { %1070 = vmatpush.bf16.msrb.mxu2 %v2109_v32  ;;  %v2189_v32 = vor.u32 %v2932_v23, %v2186_v25  ;;  %v2377_v40 = vor.u32 %v2983_v31, %v2376_v30  ;;  %v2112_v58 = vld [vmem:[#allocation8 + $0xa0] sm:$0xf]  ;;  %v2917_v59 = vld [vmem:[#allocation8 + $0xb4] sm:$0xf0]  ;;  %v2114_v61 = vld [vmem:[#allocation8 + $0xb8] sm:$0xf0] }
  0x65   : > { %1083 = vmatpush.bf16.msrb.mxu3 %v2301_v34  ;;  %1057 = vmatpush.bf16.msrb.mxu1 %v2297_v38  ;;  %v2160_v34 = vld [vmem:[#allocation8 + $0x100] sm:$0xf]  ;;  %v2974_v38 = vld [vmem:[#allocation8 + $0x284] sm:$0xf]  ;;  %v2306_v63 = vld [vmem:[#allocation8 + $0x238] sm:$0xf0]  ;;  %v2113_v1 = vor.u32 %v2917_v59, %v2112_v58 }
  0x66   : > { %v2161_v41 = vor.u32 %v2929_v35, %v2160_v34  ;;  %v2357_v45 = vor.u32 %v2974_v38, %v2354_v39  ;;  %v2962_v62 = vld [vmem:[#allocation8 + $0x224] sm:$0xf]  ;;  %v2304_v2 = vld [vmem:[#allocation8 + $0x220] sm:$0xf]  ;;  %v2965_v3 = vld [vmem:[#allocation8 + $0x234] sm:$0xf0] }
  0x67   : > { %1045 = vmatpush.bf16.msrb.mxu0 %v2081_v43  ;;  %v2977_v43 = vld [vmem:[#allocation8 + $0x294] sm:$0xf0]  ;;  %v2309_v5 = vor.u32 %v2962_v62, %v2306_v63  ;;  %v2088_v8 = vld [vmem:[#allocation8 + $0x70] sm:$0xf]  ;;  %v2090_v11 = vld [vmem:[#allocation8 + $0x88] sm:$0xf0] }
  0x68   : > { %1071 = vmatpush.bf16.msrb.mxu2 %v2085_v44  ;;  %v2165_v44 = vor.u32 %v2926_v36, %v2162_v37  ;;  %v2353_v52 = vor.u32 %v2977_v43, %v2352_v42  ;;  %v2956_v12 = vld [vmem:[#allocation8 + $0x1f4] sm:$0xf]  ;;  %v2280_v18 = vld [vmem:[#allocation8 + $0x1f0] sm:$0xf]  ;;  %v2064_v22 = vld [vmem:[#allocation8 + $0x40] sm:$0xf] }
  0x69   : > { %1084 = vmatpush.bf16.msrb.mxu3 %v2277_v46  ;;  %1058 = vmatpush.bf16.msrb.mxu1 %v2273_v50  ;;  %v2136_v46 = vld [vmem:[#allocation8 + $0xd0] sm:$0xf]  ;;  %v2968_v50 = vld [vmem:[#allocation8 + $0x254] sm:$0xf]  ;;  %v2905_v23 = vld [vmem:[#allocation8 + $0x54] sm:$0xf0] }
  0x6a   : > { %v2137_v53 = vor.u32 %v2923_v47, %v2136_v46  ;;  %v2333_v57 = vor.u32 %v2968_v50, %v2330_v51  ;;  %v2066_v25 = vld [vmem:[#allocation8 + $0x58] sm:$0xf0]  ;;  %v2950_v26 = vld [vmem:[#allocation8 + $0x1c4] sm:$0xf]  ;;  %v2953_v30 = vld [vmem:[#allocation8 + $0x1d4] sm:$0xf0] }
  0x6b   : > { %1046 = vmatpush.bf16.msrb.mxu0 %v2057_v55  ;;  %v2971_v55 = vld [vmem:[#allocation8 + $0x264] sm:$0xf0]  ;;  %v2258_v27 = vld [vmem:[#allocation8 + $0x1d8] sm:$0xf0]  ;;  %v2040_v31 = vld [vmem:[#allocation8 + $0x10] sm:$0xf] }
  0x6c   : > { %1072 = vmatpush.bf16.msrb.mxu2 %v2061_v56  ;;  %v2141_v56 = vor.u32 %v2920_v48, %v2138_v49  ;;  %v2896_v34 = vld [vmem:[#allocation8 + $0x14] sm:$0xf]  ;;  %v2042_v35 = vld [vmem:[#allocation8 + $0x28] sm:$0xf0]  ;;  %v2261_v37 = vor.u32 %v2950_v26, %v2258_v27  ;;  %v2232_v49 = vld [vmem:[#allocation8 + $0x190] sm:$0xf] }
  0x6d   : > { %1085 = vmatpush.bf16.msrb.mxu3 %v2253_v60  ;;  %1059 = vmatpush.bf16.msrb.mxu1 %v2249_v0  ;;  %v2914_v60 = vld [vmem:[#allocation8 + $0xa4] sm:$0xf]  ;;  %v2329_v0 = vor.u32 %v2971_v55, %v2328_v54  ;;  %v2944_v38 = vld [vmem:[#allocation8 + $0x194] sm:$0xf]  ;;  %v2234_v39 = vld [vmem:[#allocation8 + $0x1a8] sm:$0xf0]  ;;  %v2045_v51 = vor.u32 %v2896_v34, %v2042_v35 }
  0x6e   : > { %v2117_v4 = vor.u32 %v2914_v60, %v2114_v61  ;;  %v2840_v42 = vld [vmem:[#allocation5 + $0x154] sm:$0xf]  ;;  %v2770_v48 = vld [vmem:[#allocation5 + $0x2e8] sm:$0xf0]  ;;  %v2947_v50 = vld [vmem:[#allocation8 + $0x1a4] sm:$0xf0] }
  0x6f   : > { %1047 = vmatpush.bf16.msrb.mxu0 %v2033_v9  ;;  %v2911_v9 = vld [vmem:[#allocation8 + $0x84] sm:$0xf0]  ;;  %v307_v43 = vld [vmem:[%s3350_s20] sm:$0x3]  ;;  %v2233_v59 = vor.u32 %v2947_v50, %v2232_v49  ;;  %v2837_v60 = vld [vmem:[#allocation5 + $0x134] sm:$0xf0] }
  0x70   : > { %1073 = vmatpush.bf16.msrb.mxu2 %v2037_v10  ;;  %v2908_v10 = vld [vmem:[#allocation8 + $0x74] sm:$0xf]  ;;  %v2089_v17 = vor.u32 %v2911_v9, %v2088_v8  ;;  %1146 = vst [vmem:[#allocation1] ss:$9 sm:$0xff] %v307_v43  ;;  %v2891_v54 = vld [vmem:[#allocation5 + $0x2e4] sm:$0xf0] }
  0x71   : > { %1086 = vmatpush.bf16.msrb.mxu3 %v2229_v13  ;;  %1060 = vmatpush.bf16.msrb.mxu1 %v2225_v24  ;;  %v2282_v13 = vld [vmem:[#allocation8 + $0x208] sm:$0xf0]  ;;  %v2902_v24 = vld [vmem:[#allocation8 + $0x44] sm:$0xf]  ;;  %v2888_v46 = vld [vmem:[#allocation5 + $0x2d4] sm:$0xf] }
  0x72   : > { %1048 = vmatmul.bf16.vlgmr.msrb.gmra.mxu0 %v3364_v15  ;;  %v2285_v21 = vor.u32 %v2956_v12, %v2282_v13  ;;  %v2069_v36 = vor.u32 %v2902_v24, %v2066_v25  ;;  %v2773_v58 = vor.u32 %v2888_v46, %v2770_v48  ;;  %v2834_v61 = vld [vmem:[#allocation5 + $0x124] sm:$0xf]  ;;  %v2554_v62 = vld [vmem:[#allocation5 + $0x138] sm:$0xf0]  ;;  %v2528_v8 = vld [vmem:[#allocation5 + $0xf0] sm:$0xf] }
  0x73   : > { %1092 = vmatpush.bf16.msra.mxu0 %v2209_v14  ;;  %1074 = vmatmul.bf16.vlgmr.msrb.gmra.mxu2 %v3364_v15  ;;  %v2305_v14 = vor.u32 %v2965_v3, %v2304_v2  ;;  %v2744_v2 = vld [vmem:[#allocation5 + $0x2a0] sm:$0xf]  ;;  %v2885_v3 = vld [vmem:[#allocation5 + $0x2b4] sm:$0xf0]  ;;  %v2530_v12 = vld [vmem:[#allocation5 + $0x108] sm:$0xf0] }
  0x74   : > { %1118 = vmatpush.bf16.msra.mxu2 %v2213_v19  ;;  %1087 = vmatmul.bf16.vlgmr.msrb.gmra.mxu3 %v3368_v16  ;;  %v2959_v19 = vld [vmem:[#allocation8 + $0x204] sm:$0xf0]  ;;  %v2745_v13 = vor.u32 %v2885_v3, %v2744_v2  ;;  %v2825_v24 = vld [vmem:[#allocation5 + $0xd4] sm:$0xf0]  ;;  %v2822_v25 = vld [vmem:[#allocation5 + $0xc4] sm:$0xf] }
  0x75   : > { %1131 = vmatpush.bf16.msra.mxu3 %v2405_v20  ;;  %1105 = vmatpush.bf16.msra.mxu1 %v2401_v28  ;;  %v2093_v20 = vor.u32 %v2908_v10, %v2090_v11  ;;  %v2281_v28 = vor.u32 %v2959_v19, %v2280_v18  ;;  %v2831_v10 = vld [vmem:[#allocation5 + $0x104] sm:$0xf0]  ;;  %v2828_v11 = vld [vmem:[#allocation5 + $0xf4] sm:$0xf]  ;;  %v2720_v18 = vld [vmem:[#allocation5 + $0x270] sm:$0xf] }
  0x76   : > { %1061 = vmatmul.bf16.vlgmr.msrb.gmra.mxu1 %v3368_v16  ;;  %v2879_v19 = vld [vmem:[#allocation5 + $0x284] sm:$0xf0]  ;;  %v2506_v26 = vld [vmem:[#allocation5 + $0xd8] sm:$0xf0]  ;;  %v2813_v46 = vld [vmem:[#allocation5 + $0x74] sm:$0xf0] }
  0x77   : > { %1093 = vmatpush.bf16.msra.mxu0 %v2185_v29  ;;  %v2256_v29 = vld [vmem:[#allocation8 + $0x1c0] sm:$0xf]  ;;  %v2721_v27 = vor.u32 %v2879_v19, %v2720_v18  ;;  %v2819_v35 = vld [vmem:[#allocation5 + $0xa4] sm:$0xf0]  ;;  %v2458_v48 = vld [vmem:[#allocation5 + $0x78] sm:$0xf0] }
  0x78   : > { %1119 = vmatpush.bf16.msra.mxu2 %v2189_v32  ;;  %v2065_v32 = vor.u32 %v2905_v23, %v2064_v22  ;;  %v2504_v22 = vld [vmem:[#allocation5 + $0xc0] sm:$0xf]  ;;  %v2858_v50 = vld [vmem:[#allocation5 + $0x1e4] sm:$0xf]  ;;  %v2841_v18 = vld [vmem:[#allocation5 + $0x15c] sm:$0xf] }
  0x79   : > { %1132 = vmatpush.bf16.msra.mxu3 %v2381_v33  ;;  %1106 = vmatpush.bf16.msra.mxu1 %v2377_v40  ;;  %v2899_v33 = vld [vmem:[#allocation8 + $0x24] sm:$0xf0]  ;;  %v2576_v40 = vld [vmem:[#allocation5 + $0x150] sm:$0xf]  ;;  %v2586_v19 = vld [vmem:[#allocation5 + $0x170] sm:$0xf0] }
  0x7a   : > { %v2041_v47 = vor.u32 %v2899_v33, %v2040_v31  ;;  %v2505_v31 = vor.u32 %v2825_v24, %v2504_v22  ;;  %v2480_v33 = vld [vmem:[#allocation5 + $0x90] sm:$0xf]  ;;  %v2600_v24 = vld [vmem:[#allocation5 + $0x180] sm:$0xf]  ;;  %s2795_s9 = sshll.u32 %s3288_s0, 1  ;;  %s1927_s19 = sshll.u32 %s290_s21, 4  ;;  %s1928_s19 = int_to_ptr.vmem [resolvable:$true] %s1927_s19 }
  0x7b   : > { %1094 = vmatpush.bf16.msra.mxu0 %v2161_v41  ;;  %v2843_v41 = vld [vmem:[#allocation5 + $0x164] sm:$0xf0]  ;;  %s1925_s18 = scalar_lea.hbm %s3471_s7, %s2795_s9  ;;  %s1915_s0 = scalar_lea.sflag [#allocation7], %s288_s11 }
  0x7c   : > { %1120 = vmatpush.bf16.msra.mxu2 %v2165_v44  ;;  %v2257_v44 = vor.u32 %v2953_v30, %v2256_v29  ;;  %v2577_v55 = vor.u32 %v2843_v41, %v2576_v40  ;;  %v2698_v29 = vld [vmem:[#allocation5 + $0x258] sm:$0xf0]  ;;  %v2696_v30 = vld [vmem:[#allocation5 + $0x240] sm:$0xf]  ;;  %v2672_v40 = vld [vmem:[#allocation5 + $0x210] sm:$0xf] }
  0x7d   : > { %1133 = vmatpush.bf16.msra.mxu3 %v2357_v45  ;;  %1107 = vmatpush.bf16.msra.mxu1 %v2353_v52  ;;  %v2578_v45 = vld [vmem:[#allocation5 + $0x168] sm:$0xf0]  ;;  %v2237_v52 = vor.u32 %v2944_v38, %v2234_v39  ;;  %v2864_v39 = vld [vmem:[#allocation5 + $0x214] sm:$0xf]  ;;  %v2867_v41 = vld [vmem:[#allocation5 + $0x224] sm:$0xf0] }
  0x7e   : > { %v2673_v49 = vor.u32 %v2867_v41, %v2672_v40  ;;  %v2752_v40 = vld [vmem:[#allocation5 + $0x2a8] sm:$0xf]  ;;  %v2886_v41 = vld [vmem:[#allocation5 + $0x2bc] sm:$0xf0]  ;;  %s1929_s20 = sshll.u32 %s1925_s18, 4  ;;  %s3165_s26 = scalar_lea.hbm %s3471_s7, 16  ;;  %s1930_s20 = int_to_ptr.hbm [resolvable:$true] %s1929_s20 }
  0x7f   : > { %1095 = vmatpush.bf16.msra.mxu0 %v2137_v53  ;;  %v2768_v53 = vld [vmem:[#allocation5 + $0x2d0] sm:$0xf]  ;;  %s3159_s22 = sshra.s32 %s1930_s20, 4  ;;  %s3160_s22 = int_to_ptr.hbm [resolvable:$true] %s3159_s22 }
  0x80   : > { %1121 = vmatpush.bf16.msra.mxu2 %v2141_v56  ;;  %v2581_v56 = vor.u32 %v2840_v42, %v2578_v45  ;;  %v2769_v63 = vor.u32 %v2891_v54, %v2768_v53  ;;  %v2481_v42 = vor.u32 %v2819_v35, %v2480_v33  ;;  %v2861_v53 = vld [vmem:[#allocation5 + $0x1f4] sm:$0xf0]  ;;  %v2562_v35 = vld [vmem:[#allocation5 + $0x140] sm:$0xf0]  ;;  %s3161_s23 = scalar_lea.hbm %s3160_s22, 2  ;;  %p3166_p4 = scmp.lt.s32.totalorder %s3160_s22, %s3471_s7 }
  0x81   : > { %1134 = vmatpush.bf16.msra.mxu3 %v2333_v57  ;;  %1108 = vmatpush.bf16.msra.mxu1 %v2329_v0  ;;  %v2552_v57 = vld [vmem:[#allocation5 + $0x120] sm:$0xf]  ;;  %v2882_v0 = vld [vmem:[#allocation5 + $0x2a4] sm:$0xf]  ;;  %p3162_p1 = scmp.ne.s32.totalorder %s3160_s22, %s3161_s23  ;;  %p3167_p7 = scmp.lt.s32.totalorder %s3165_s26, %s3161_s23 }
  0x83   : > { %1096 = vmatpush.bf16.msra.mxu0 %v2113_v1  ;;  %v2746_v1 = vld [vmem:[#allocation5 + $0x2b8] sm:$0xf0]  ;;  %p3163_p2 = pnand %p3162_p1, %p3305_p5  ;;  %p3168_p8 = por %p3167_p7, %p3166_p4 }
  0x84   : > { %1122 = vmatpush.bf16.msra.mxu2 %v2117_v4  ;;  %v2553_v4 = vor.u32 %v2837_v60, %v2552_v57  ;;  %v2749_v9 = vor.u32 %v2882_v0, %v2746_v1  ;;  %v2434_v60 = vld [vmem:[#allocation5 + $0x48] sm:$0xf0]  ;;  %v2624_v0 = vld [vmem:[#allocation5 + $0x1b0] sm:$0xf]  ;;  %v2855_v1 = vld [vmem:[#allocation5 + $0x1c4] sm:$0xf0] }
  0x85   : > { %1135 = vmatpush.bf16.msra.mxu3 %v2309_v5  ;;  %1109 = vmatpush.bf16.msra.mxu1 %v2305_v14  ;;  %v2557_v5 = vor.u32 %v2834_v61, %v2554_v62  ;;  %v2876_v14 = vld [vmem:[#allocation5 + $0x274] sm:$0xf]  ;;  %p3164_p3 = pneg %p3163_p2 }
  0x86   : > { %v2852_v62 = vld [vmem:[#allocation5 + $0x1b4] sm:$0xf] }
  0x87   : > { %1097 = vmatpush.bf16.msra.mxu0 %v2089_v17  ;;  %v2722_v17 = vld [vmem:[#allocation5 + $0x288] sm:$0xf0]  ;;  %p3169_p9 = pnand %p3168_p8, %p3164_p3 }
  0x88   : > { %1123 = vmatpush.bf16.msra.mxu2 %v2093_v20  ;;  %v2529_v20 = vor.u32 %v2831_v10, %v2528_v8  ;;  %v2725_v23 = vor.u32 %v2876_v14, %v2722_v17  ;;  %v2798_v8 = vld [vmem:[#allocation5 + $0x4] sm:$0xf]  ;;  %v2410_v10 = vld [vmem:[#allocation5 + $0x18] sm:$0xf0]  ;;  %v2584_v14 = vld [vmem:[#allocation5 + $0x158] sm:$0xf] }
  0x89   : > { %1136 = vmatpush.bf16.msra.mxu3 %v2285_v21  ;;  %1110 = vmatpush.bf16.msra.mxu1 %v2281_v28  ;;  %v2533_v21 = vor.u32 %v2828_v11, %v2530_v12  ;;  %v2870_v28 = vld [vmem:[#allocation5 + $0x244] sm:$0xf]  ;;  %v2602_v12 = vld [vmem:[#allocation5 + $0x198] sm:$0xf0]  ;;  %v2844_v17 = vld [vmem:[#allocation5 + $0x16c] sm:$0xf0] }
  0x8a   : > { %v2701_v34 = vor.u32 %v2870_v28, %v2698_v29  ;;  %v2846_v11 = vld [vmem:[#allocation5 + $0x184] sm:$0xf]  ;;  %v2776_v28 = vld [vmem:[#allocation5 + $0x2d8] sm:$0xf]  ;;  %v2892_v29 = vld [vmem:[#allocation5 + $0x2ec] sm:$0xf0] }
  0x8b   : > { %1098 = vmatpush.bf16.msra.mxu0 %v2065_v32  ;;  %v2509_v32 = vor.u32 %v2822_v25, %v2506_v26  ;;  %v2849_v25 = vld [vmem:[#allocation5 + $0x194] sm:$0xf0]  ;;  %v2605_v26 = vor.u32 %v2846_v11, %v2602_v12  ;;  %v2865_v12 = vld [vmem:[#allocation5 + $0x21c] sm:$0xf] }
  0x8c   : > { %1124 = vmatpush.bf16.msra.mxu2 %v2069_v36  ;;  %v2816_v36 = vld [vmem:[#allocation5 + $0x94] sm:$0xf]  ;;  %v2601_v33 = vor.u32 %v2849_v25, %v2600_v24  ;;  %v2466_v24 = vld [vmem:[#allocation5 + $0x80] sm:$0xf0] }
  0x8d   : > { %1137 = vmatpush.bf16.msra.mxu3 %v2261_v37  ;;  %1111 = vmatpush.bf16.msra.mxu1 %v2257_v44  ;;  %v2482_v37 = vld [vmem:[#allocation5 + $0xa8] sm:$0xf0]  ;;  %v2456_v44 = vld [vmem:[#allocation5 + $0x60] sm:$0xf] }
  0x8e   : > { %v2485_v43 = vor.u32 %v2816_v36, %v2482_v37  ;;  %v2457_v54 = vor.u32 %v2813_v46, %v2456_v44  ;;  %v3383_v36 = vld [vmem:[#allocation1] sm:$0xff]  ;;  %v2777_v37 = vor.u32 %v2892_v29, %v2776_v28  ;;  %v2656_v29 = vld [vmem:[#allocation5 + $0x1e8] sm:$0xf] }
  0x8f   : > { %1099 = vmatpush.bf16.msra.mxu0 %v2041_v47  ;;  %v2810_v47 = vld [vmem:[#allocation5 + $0x64] sm:$0xf]  ;;  %v2536_v44 = vld [vmem:[#allocation5 + $0xf8] sm:$0xf] }
  0x90   : > { %1125 = vmatpush.bf16.msra.mxu2 %v2045_v51  ;;  %v2650_v51 = vld [vmem:[#allocation5 + $0x1f8] sm:$0xf0] }
  0x91   : > { %1138 = vmatpush.bf16.msra.mxu3 %v2237_v52  ;;  %1112 = vmatpush.bf16.msra.mxu1 %v2233_v59  ;;  %v2648_v52 = vld [vmem:[#allocation5 + $0x1e0] sm:$0xf]  ;;  %v2653_v57 = vor.u32 %v2858_v50, %v2650_v51  ;;  %v2804_v59 = vld [vmem:[#allocation5 + $0x34] sm:$0xf]  ;;  %v2877_v50 = vld [vmem:[#allocation5 + $0x27c] sm:$0xf] }
  0x92   : > { %1100 = vmatmul.bf16.vlgmr.msra.gmra.mxu0 %v3364_v15  ;;  %v2649_v61 = vor.u32 %v2861_v53, %v2648_v52  ;;  %v2437_v3 = vor.u32 %v2804_v59, %v2434_v60  ;;  %v2730_v51 = vld [vmem:[#allocation5 + $0x290] sm:$0xf0]  ;;  %v2728_v53 = vld [vmem:[#allocation5 + $0x278] sm:$0xf]  ;;  %v2823_v59 = vld [vmem:[#allocation5 + $0xcc] sm:$0xf] }
  0x93   : > { %1644 = vmatpush.bf16.msrb.mxu0 %v2577_v55  ;;  %1126 = vmatmul.bf16.vlgmr.msra.gmra.mxu2 %v3364_v15  ;;  %v2873_v15 = vld [vmem:[#allocation5 + $0x254] sm:$0xf0]  ;;  %v2461_v55 = vor.u32 %v2810_v47, %v2458_v48  ;;  %v2829_v47 = vld [vmem:[#allocation5 + $0xfc] sm:$0xf]  ;;  %v2538_v48 = vld [vmem:[#allocation5 + $0x110] sm:$0xf0] }
  0x94   : > { %1670 = vmatpush.bf16.msrb.mxu2 %v2581_v56  ;;  %1139 = vmatmul.bf16.vlgmr.msra.gmra.mxu3 %v3368_v16  ;;  %v2697_v38 = vor.u32 %v2873_v15, %v2696_v30  ;;  %v2432_v56 = vld [vmem:[#allocation5 + $0x30] sm:$0xf]  ;;  %v2589_v30 = vor.u32 %v2841_v18, %v2586_v19  ;;  %v2514_v60 = vld [vmem:[#allocation5 + $0xe0] sm:$0xf0] }
  0x95   : > { %1683 = vmatpush.bf16.msrb.mxu3 %v2773_v58  ;;  %1657 = vmatpush.bf16.msrb.mxu1 %v2769_v63  ;;  %v2807_v58 = vld [vmem:[#allocation5 + $0x44] sm:$0xf0]  ;;  %v2626_v63 = vld [vmem:[#allocation5 + $0x1c8] sm:$0xf0]  ;;  %v2868_v18 = vld [vmem:[#allocation5 + $0x22c] sm:$0xf0] }
  0x96   : > { %1113 = vmatmul.bf16.vlgmr.msra.gmra.mxu1 %v3368_v16  ;;  %v2674_v16 = vld [vmem:[#allocation5 + $0x228] sm:$0xf0]  ;;  %v2433_v2 = vor.u32 %v2807_v58, %v2432_v56  ;;  %v2512_v56 = vld [vmem:[#allocation5 + $0xc8] sm:$0xf]  ;;  %v2733_v58 = vor.u32 %v2877_v50, %v2730_v51  ;;  %v2610_v50 = vld [vmem:[#allocation5 + $0x1a0] sm:$0xf0] }
  0x97   : > { %1645 = vmatpush.bf16.msrb.mxu0 %v2553_v4  ;;  %v2677_v45 = vor.u32 %v2864_v39, %v2674_v16  ;;  %v2408_v4 = vld [vmem:[#allocation5] sm:$0xf]  ;;  %v2754_v39 = vld [vmem:[#allocation5 + $0x2c0] sm:$0xf0] }
  0x98   : > { %1671 = vmatpush.bf16.msrb.mxu2 %v2557_v5  ;;  %v2801_v5 = vld [vmem:[#allocation5 + $0x14] sm:$0xf0]  ;;  %v2592_v51 = vld [vmem:[#allocation5 + $0x160] sm:$0xf] }
  0x99   : > { %1684 = vmatpush.bf16.msrb.mxu3 %v2749_v9  ;;  %1658 = vmatpush.bf16.msrb.mxu1 %v2745_v13  ;;  %v2629_v9 = vor.u32 %v2852_v62, %v2626_v63  ;;  %v2625_v13 = vor.u32 %v2855_v1, %v2624_v0  ;;  %v2409_v22 = vor.u32 %v2801_v5, %v2408_v4  ;;  %v2871_v62 = vld [vmem:[#allocation5 + $0x24c] sm:$0xf]  ;;  %v2706_v63 = vld [vmem:[#allocation5 + $0x260] sm:$0xf0]  ;;  %v2704_v1 = vld [vmem:[#allocation5 + $0x248] sm:$0xf] }
  0x9a   : > { %v2488_v4 = vld [vmem:[#allocation5 + $0x98] sm:$0xf]  ;;  %v2820_v5 = vld [vmem:[#allocation5 + $0xac] sm:$0xf0] }
  0x9b   : > { %1646 = vmatpush.bf16.msrb.mxu0 %v2529_v20  ;;  %v2889_v20 = vld [vmem:[#allocation5 + $0x2dc] sm:$0xf] }
  0x9c   : > { %1672 = vmatpush.bf16.msrb.mxu2 %v2533_v21  ;;  %v2778_v21 = vld [vmem:[#allocation5 + $0x2f0] sm:$0xf0] }
  0x9d   : > { %1685 = vmatpush.bf16.msrb.mxu3 %v2725_v23  ;;  %1659 = vmatpush.bf16.msrb.mxu1 %v2721_v27  ;;  %v2413_v23 = vor.u32 %v2798_v8, %v2410_v10  ;;  %v2585_v27 = vor.u32 %v2844_v17, %v2584_v14  ;;  %v2781_v15 = vor.u32 %v2889_v20, %v2778_v21  ;;  %v2490_v10 = vld [vmem:[#allocation5 + $0xb0] sm:$0xf0]  ;;  %v2680_v17 = vld [vmem:[#allocation5 + $0x218] sm:$0xf]  ;;  %v2464_v20 = vld [vmem:[#allocation5 + $0x68] sm:$0xf] }
  0x9e   : > { %v2709_v8 = vor.u32 %v2871_v62, %v2706_v63  ;;  %v2489_v14 = vor.u32 %v2820_v5, %v2488_v4  ;;  %v2814_v21 = vld [vmem:[#allocation5 + $0x7c] sm:$0xf0]  ;;  %v2681_v25 = vor.u32 %v2868_v18, %v2680_v17  ;;  %v2568_v5 = vld [vmem:[#allocation5 + $0x130] sm:$0xf]  ;;  %v2887_v18 = vld [vmem:[#allocation5 + $0x2c4] sm:$0xf0] }
  0x9f   : > { %1647 = vmatpush.bf16.msrb.mxu0 %v2505_v31  ;;  %v2560_v31 = vld [vmem:[#allocation5 + $0x128] sm:$0xf]  ;;  %v2465_v28 = vor.u32 %v2814_v21, %v2464_v20  ;;  %v2760_v17 = vld [vmem:[#allocation5 + $0x2b0] sm:$0xf]  ;;  %v2544_v21 = vld [vmem:[#allocation5 + $0x100] sm:$0xf] }
  0xa0   : > { %1673 = vmatpush.bf16.msrb.mxu2 %v2509_v32  ;;  %v2838_v32 = vld [vmem:[#allocation5 + $0x13c] sm:$0xf0] }
  0xa1   : > { %1686 = vmatpush.bf16.msrb.mxu3 %v2701_v34  ;;  %1660 = vmatpush.bf16.msrb.mxu1 %v2697_v38  ;;  %v2835_v34 = vld [vmem:[#allocation5 + $0x12c] sm:$0xf]  ;;  %v2561_v16 = vor.u32 %v2838_v32, %v2560_v31  ;;  %v2440_v31 = vld [vmem:[#allocation5 + $0x38] sm:$0xf]  ;;  %v2808_v32 = vld [vmem:[#allocation5 + $0x4c] sm:$0xf0] }
  0xa2   : > { %v2883_v38 = vld [vmem:[#allocation5 + $0x2ac] sm:$0xf] }
  0xa3   : > { %1648 = vmatpush.bf16.msrb.mxu0 %v2481_v42  ;;  %v3385_v42 = vld [vmem:[#allocation1 + $0x9] sm:$0xff]  ;;  %v2757_v46 = vor.u32 %v2883_v38, %v2754_v39  ;;  %v2634_v39 = vld [vmem:[#allocation5 + $0x1d0] sm:$0xf0] }
  0xa4   : > { %1674 = vmatpush.bf16.msrb.mxu2 %v2485_v43  ;;  %v2565_v43 = vor.u32 %v2835_v34, %v2562_v35  ;;  %v2805_v34 = vld [vmem:[#allocation5 + $0x3c] sm:$0xf]  ;;  %v2442_v35 = vld [vmem:[#allocation5 + $0x50] sm:$0xf0] }
  0xa5   : > { %1687 = vmatpush.bf16.msrb.mxu3 %v2677_v45  ;;  %1661 = vmatpush.bf16.msrb.mxu1 %v2673_v49  ;;  %v2832_v45 = vld [vmem:[#allocation5 + $0x10c] sm:$0xf0]  ;;  %v2753_v49 = vor.u32 %v2886_v41, %v2752_v40  ;;  %v2853_v38 = vld [vmem:[#allocation5 + $0x1bc] sm:$0xf]  ;;  %v2441_v40 = vor.u32 %v2808_v32, %v2440_v31 }
  0xa6   : > { %v2537_v52 = vor.u32 %v2832_v45, %v2536_v44  ;;  %v2856_v41 = vld [vmem:[#allocation5 + $0x1cc] sm:$0xf0]  ;;  %v2802_v44 = vld [vmem:[#allocation5 + $0x1c] sm:$0xf0]  ;;  %v2445_v45 = vor.u32 %v2805_v34, %v2442_v35  ;;  %v2824_v34 = vld [vmem:[#allocation5 + $0xd4] sm:$0xf] }
  0xa7   : > { %1649 = vmatpush.bf16.msrb.mxu0 %v2457_v54  ;;  %v2880_v54 = vld [vmem:[#allocation5 + $0x28c] sm:$0xf0]  ;;  %v2522_v35 = vld [vmem:[#allocation5 + $0xe8] sm:$0xf0] }
  0xa8   : > { %1675 = vmatpush.bf16.msrb.mxu2 %v2461_v55  ;;  %v2541_v55 = vor.u32 %v2829_v47, %v2538_v48  ;;  %v2418_v47 = vld [vmem:[#allocation5 + $0x20] sm:$0xf0]  ;;  %v2847_v48 = vld [vmem:[#allocation5 + $0x18c] sm:$0xf]  ;;  %v2520_v32 = vld [vmem:[#allocation5 + $0xd0] sm:$0xf] }
  0xa9   : > { %1688 = vmatpush.bf16.msrb.mxu3 %v2653_v57  ;;  %1662 = vmatpush.bf16.msrb.mxu1 %v2649_v61  ;;  %v2826_v57 = vld [vmem:[#allocation5 + $0xdc] sm:$0xf0]  ;;  %v2729_v61 = vor.u32 %v2880_v54, %v2728_v53  ;;  %v2842_v54 = vld [vmem:[#allocation5 + $0x164] sm:$0xf]  ;;  %v2613_v63 = vor.u32 %v2847_v48, %v2610_v50  ;;  %v2498_v48 = vld [vmem:[#allocation5 + $0xb8] sm:$0xf0] }
  0xaa   : > { %v2513_v0 = vor.u32 %v2826_v57, %v2512_v56  ;;  %v2890_v56 = vld [vmem:[#allocation5 + $0x2e4] sm:$0xf]  ;;  %v2690_v50 = vld [vmem:[#allocation5 + $0x238] sm:$0xf0] }
  0xab   : > { %1650 = vmatpush.bf16.msrb.mxu0 %v2433_v2  ;;  %v2874_v2 = vld [vmem:[#allocation5 + $0x25c] sm:$0xf0] }
  0xac   : > { %1676 = vmatpush.bf16.msrb.mxu2 %v2437_v3  ;;  %v2517_v3 = vor.u32 %v2823_v59, %v2514_v60  ;;  %v2705_v11 = vor.u32 %v2874_v2, %v2704_v1  ;;  %v2608_v59 = vld [vmem:[#allocation5 + $0x188] sm:$0xf]  ;;  %v2850_v60 = vld [vmem:[#allocation5 + $0x19c] sm:$0xf0]  ;;  %v2893_v2 = vld [vmem:[#allocation5 + $0x2f4] sm:$0xf0] }
  0xad   : > { %1689 = vmatpush.bf16.msrb.mxu3 %v2629_v9  ;;  %1663 = vmatpush.bf16.msrb.mxu1 %v2625_v13  ;;  %v2817_v9 = vld [vmem:[#allocation5 + $0x9c] sm:$0xf]  ;;  %v2682_v13 = vld [vmem:[#allocation5 + $0x230] sm:$0xf0]  ;;  %v2784_v1 = vld [vmem:[#allocation5 + $0x2e0] sm:$0xf]  ;;  %v2609_v4 = vor.u32 %v2850_v60, %v2608_v59 }
  0xae   : > { %v2493_v19 = vor.u32 %v2817_v9, %v2490_v10  ;;  %v2836_v9 = vld [vmem:[#allocation5 + $0x134] sm:$0xf]  ;;  %v2570_v10 = vld [vmem:[#allocation5 + $0x148] sm:$0xf0] }
  0xaf   : > { %1651 = vmatpush.bf16.msrb.mxu0 %v2409_v22  ;;  %v2685_v22 = vor.u32 %v2865_v12, %v2682_v13  ;;  %v2762_v12 = vld [vmem:[#allocation5 + $0x2c8] sm:$0xf0]  ;;  %v2785_v13 = vor.u32 %v2893_v2, %v2784_v1  ;;  %v2812_v59 = vld [vmem:[#allocation5 + $0x74] sm:$0xf]  ;;  %v2664_v1 = vld [vmem:[#allocation5 + $0x1f0] sm:$0xf] }
  0xb0   : > { %1677 = vmatpush.bf16.msrb.mxu2 %v2413_v23  ;;  %v2811_v23 = vld [vmem:[#allocation5 + $0x6c] sm:$0xf]  ;;  %v2863_v2 = vld [vmem:[#allocation5 + $0x204] sm:$0xf0] }
  0xb1   : > { %1690 = vmatpush.bf16.msrb.mxu3 %v2605_v26  ;;  %1664 = vmatpush.bf16.msrb.mxu1 %v2601_v33  ;;  %v2859_v26 = vld [vmem:[#allocation5 + $0x1ec] sm:$0xf] }
  0xb2   : > { %1652 = vmatmul.bf16.vlgmr.msrb.gmra.mxu0 %v3383_v36  ;;  %v2474_v60 = vld [vmem:[#allocation5 + $0x88] sm:$0xf0] }
  0xb3   : > { %1696 = vmatpush.bf16.msra.mxu0 %v2585_v27  ;;  %1678 = vmatmul.bf16.vlgmr.msrb.gmra.mxu2 %v3383_v36  ;;  %v2658_v27 = vld [vmem:[#allocation5 + $0x200] sm:$0xf0] }
  0xb4   : > { %1722 = vmatpush.bf16.msra.mxu2 %v2589_v30  ;;  %1691 = vmatmul.bf16.vlgmr.msrb.gmra.mxu3 %v3385_v42  ;;  %v2862_v30 = vld [vmem:[#allocation5 + $0x1fc] sm:$0xf0]  ;;  %v2661_v33 = vor.u32 %v2859_v26, %v2658_v27  ;;  %v2738_v26 = vld [vmem:[#allocation5 + $0x298] sm:$0xf0]  ;;  %v2761_v27 = vor.u32 %v2887_v18, %v2760_v17  ;;  %v2665_v17 = vor.u32 %v2863_v2, %v2664_v1 }
  0xb5   : > { %1735 = vmatpush.bf16.msra.mxu3 %v2781_v15  ;;  %1709 = vmatpush.bf16.msra.mxu1 %v2777_v37  ;;  %v2469_v15 = vor.u32 %v2811_v23, %v2466_v24  ;;  %v2657_v37 = vor.u32 %v2862_v30, %v2656_v29  ;;  %v2830_v23 = vld [vmem:[#allocation5 + $0x104] sm:$0xf]  ;;  %v2546_v24 = vld [vmem:[#allocation5 + $0x118] sm:$0xf0]  ;;  %v2736_v29 = vld [vmem:[#allocation5 + $0x280] sm:$0xf] }
  0xb6   : > { %1665 = vmatmul.bf16.vlgmr.msrb.gmra.mxu1 %v3385_v42  ;;  %v2881_v30 = vld [vmem:[#allocation5 + $0x294] sm:$0xf0] }
  0xb7   : > { %1697 = vmatpush.bf16.msra.mxu0 %v2561_v16  ;;  %v2632_v16 = vld [vmem:[#allocation5 + $0x1b8] sm:$0xf] }
  0xb8   : > { %1723 = vmatpush.bf16.msra.mxu2 %v2565_v43  ;;  %v2416_v43 = vld [vmem:[#allocation5 + $0x8] sm:$0xf]  ;;  %v2633_v53 = vor.u32 %v2856_v41, %v2632_v16 }
  0xb9   : > { %1736 = vmatpush.bf16.msra.mxu3 %v2757_v46  ;;  %1710 = vmatpush.bf16.msra.mxu1 %v2753_v49  ;;  %v2799_v46 = vld [vmem:[#allocation5 + $0xc] sm:$0xf]  ;;  %v2637_v49 = vor.u32 %v2853_v38, %v2634_v39  ;;  %v2417_v57 = vor.u32 %v2802_v44, %v2416_v43  ;;  %v2737_v39 = vor.u32 %v2881_v30, %v2736_v29  ;;  %v2875_v41 = vld [vmem:[#allocation5 + $0x264] sm:$0xf0] }
  0xba   : > { %v2714_v38 = vld [vmem:[#allocation5 + $0x268] sm:$0xf0]  ;;  %v2525_v43 = vor.u32 %v2824_v34, %v2522_v35  ;;  %v2851_v34 = vld [vmem:[#allocation5 + $0x1a4] sm:$0xf0] }
  0xbb   : > { %1698 = vmatpush.bf16.msra.mxu0 %v2537_v52  ;;  %v2845_v52 = vld [vmem:[#allocation5 + $0x174] sm:$0xf0]  ;;  %v2618_v29 = vld [vmem:[#allocation5 + $0x1a8] sm:$0xf0] }
  0xbc   : > { %1724 = vmatpush.bf16.msra.mxu2 %v2541_v55  ;;  %v2594_v55 = vld [vmem:[#allocation5 + $0x178] sm:$0xf0]  ;;  %v2593_v62 = vor.u32 %v2845_v52, %v2592_v51 }
  0xbd   : > { %1737 = vmatpush.bf16.msra.mxu3 %v2733_v58  ;;  %1711 = vmatpush.bf16.msra.mxu1 %v2729_v61  ;;  %v2786_v58 = vld [vmem:[#allocation5 + $0x2f8] sm:$0xf0]  ;;  %v2421_v61 = vor.u32 %v2799_v46, %v2418_v47  ;;  %v2821_v46 = vld [vmem:[#allocation5 + $0xb4] sm:$0xf0]  ;;  %v2818_v47 = vld [vmem:[#allocation5 + $0xa4] sm:$0xf] }
  0xbf   : > { %1699 = vmatpush.bf16.msra.mxu0 %v2513_v0  ;;  %v2597_v0 = vor.u32 %v2842_v54, %v2594_v55  ;;  %v2869_v54 = vld [vmem:[#allocation5 + $0x234] sm:$0xf0]  ;;  %v2501_v55 = vor.u32 %v2818_v47, %v2498_v48 }
  0xc0   : > { %1725 = vmatpush.bf16.msra.mxu2 %v2517_v3  ;;  %v2789_v3 = vor.u32 %v2890_v56, %v2786_v58  ;;  %v2815_v58 = vld [vmem:[#allocation5 + $0x84] sm:$0xf0] }
  0xc1   : > { %1738 = vmatpush.bf16.msra.mxu3 %v2709_v8  ;;  %1712 = vmatpush.bf16.msra.mxu1 %v2705_v11  ;;  %v2839_v8 = vld [vmem:[#allocation5 + $0x144] sm:$0xf0]  ;;  %v2884_v11 = vld [vmem:[#allocation5 + $0x2b4] sm:$0xf] }
  0xc2   : > { %v2765_v20 = vor.u32 %v2884_v11, %v2762_v12  ;;  %v2854_v11 = vld [vmem:[#allocation5 + $0x1c4] sm:$0xf]  ;;  %v2642_v12 = vld [vmem:[#allocation5 + $0x1d8] sm:$0xf0] }
  0xc3   : > { %1700 = vmatpush.bf16.msra.mxu0 %v2489_v14  ;;  %v2569_v14 = vor.u32 %v2839_v8, %v2568_v5  ;;  %v2448_v5 = vld [vmem:[#allocation5 + $0x40] sm:$0xf]  ;;  %v2809_v8 = vld [vmem:[#allocation5 + $0x54] sm:$0xf0] }
  0xc4   : > { %1726 = vmatpush.bf16.msra.mxu2 %v2493_v19  ;;  %v2573_v19 = vor.u32 %v2836_v9, %v2570_v10  ;;  %v2806_v9 = vld [vmem:[#allocation5 + $0x44] sm:$0xf]  ;;  %v2450_v10 = vld [vmem:[#allocation5 + $0x58] sm:$0xf0] }
  0xc5   : > { %1739 = vmatpush.bf16.msra.mxu3 %v2685_v22  ;;  %1713 = vmatpush.bf16.msra.mxu1 %v2681_v25  ;;  %v2833_v22 = vld [vmem:[#allocation5 + $0x114] sm:$0xf0]  ;;  %v2878_v25 = vld [vmem:[#allocation5 + $0x284] sm:$0xf] }
  0xc6   : > { %v2741_v31 = vor.u32 %v2878_v25, %v2738_v26  ;;  %v2803_v25 = vld [vmem:[#allocation5 + $0x24] sm:$0xf0]  ;;  %v2800_v26 = vld [vmem:[#allocation5 + $0x14] sm:$0xf] }
  0xc7   : > { %1701 = vmatpush.bf16.msra.mxu0 %v2465_v28  ;;  %v2545_v28 = vor.u32 %v2833_v22, %v2544_v21  ;;  %v2857_v21 = vld [vmem:[#allocation5 + $0x1d4] sm:$0xf0]  ;;  %v2453_v22 = vor.u32 %v2806_v9, %v2450_v10 }
  0xc8   : > { %1727 = vmatpush.bf16.msra.mxu2 %v2469_v15  ;;  %v2549_v15 = vor.u32 %v2830_v23, %v2546_v24  ;;  %v2645_v23 = vor.u32 %v2854_v11, %v2642_v12  ;;  %v2424_v24 = vld [vmem:[#allocation5 + $0x10] sm:$0xf] }
  0xc9   : > { %1740 = vmatpush.bf16.msra.mxu3 %v2661_v33  ;;  %1714 = vmatpush.bf16.msra.mxu1 %v2657_v37  ;;  %v2827_v33 = vld [vmem:[#allocation5 + $0xe4] sm:$0xf0]  ;;  %v2872_v37 = vld [vmem:[#allocation5 + $0x254] sm:$0xf] }
  0xca   : > { %v2521_v16 = vor.u32 %v2827_v33, %v2520_v32  ;;  %v2717_v44 = vor.u32 %v2872_v37, %v2714_v38  ;;  %v2425_v32 = vor.u32 %v2803_v25, %v2424_v24  ;;  %v2616_v33 = vld [vmem:[#allocation5 + $0x190] sm:$0xf] }
  0xcb   : > { %1702 = vmatpush.bf16.msra.mxu0 %v2441_v40  ;;  %v2712_v40 = vld [vmem:[#allocation5 + $0x250] sm:$0xf] }
  0xcc   : > { %1728 = vmatpush.bf16.msra.mxu2 %v2445_v45  ;;  %v2496_v45 = vld [vmem:[#allocation5 + $0xa0] sm:$0xf]  ;;  %v2713_v51 = vor.u32 %v2875_v41, %v2712_v40  ;;  %v2617_v40 = vor.u32 %v2851_v34, %v2616_v33 }
  0xcd   : > { %1741 = vmatpush.bf16.msra.mxu3 %v2637_v49  ;;  %1715 = vmatpush.bf16.msra.mxu1 %v2633_v53  ;;  %v2866_v49 = vld [vmem:[#allocation5 + $0x224] sm:$0xf]  ;;  %v2497_v52 = vor.u32 %v2821_v46, %v2496_v45  ;;  %v2688_v53 = vld [vmem:[#allocation5 + $0x220] sm:$0xf] }
  0xce   : > { %v2693_v56 = vor.u32 %v2866_v49, %v2690_v50 }
  0xcf   : > { %1703 = vmatpush.bf16.msra.mxu0 %v2417_v57  ;;  %v2472_v57 = vld [vmem:[#allocation5 + $0x70] sm:$0xf] }
  0xd0   : > { %1729 = vmatpush.bf16.msra.mxu2 %v2421_v61  ;;  %v2860_v61 = vld [vmem:[#allocation5 + $0x1f4] sm:$0xf] }
  0xd1   : > { %1742 = vmatpush.bf16.msra.mxu3 %v2613_v63  ;;  %1716 = vmatpush.bf16.msra.mxu1 %v2609_v4  ;;  %v2689_v63 = vor.u32 %v2869_v54, %v2688_v53 }
  0xd2   : > { %1704 = vmatmul.bf16.vlgmr.msra.gmra.mxu0 %v3383_v36 }
  0xd3   : > { %1748 = vmatpush.bf16.msrb.mxu0 %v2593_v62  ;;  %1730 = vmatmul.bf16.vlgmr.msra.gmra.mxu2 %v3383_v36  ;;  %v2666_v62 = vld [vmem:[#allocation5 + $0x208] sm:$0xf0] }
  0xd4   : > { %1774 = vmatpush.bf16.msrb.mxu2 %v2597_v0  ;;  %1743 = vmatmul.bf16.vlgmr.msra.gmra.mxu3 %v3385_v42  ;;  %v2473_v0 = vor.u32 %v2815_v58, %v2472_v57  ;;  %v2669_v4 = vor.u32 %v2860_v61, %v2666_v62  ;;  %v3410_v62 = vld [vmem:[%s3469_s5] sm:$0x3f] }
  0xd5   : > { %1787 = vmatpush.bf16.msrb.mxu3 %v2789_v3  ;;  %1761 = vmatpush.bf16.msrb.mxu1 %v2785_v13  ;;  %v2477_v3 = vor.u32 %v2812_v59, %v2474_v60  ;;  %v997_v13 = vpop.f32.mrf.mxu0 }
  0xd6   : > { %1717 = vmatmul.bf16.vlgmr.msra.gmra.mxu1 %v3385_v42  ;;  %v1023_v30 = vpop.f32.mrf.mxu2 }
  0xd7   : > { %1749 = vmatpush.bf16.msrb.mxu0 %v2569_v14  ;;  %v1010_v14 = vpop.f32.mrf.mxu1 }
  0xd8   : > { %1775 = vmatpush.bf16.msrb.mxu2 %v2573_v19  ;;  %v3395_v18 = vadd.f32 %v1010_v14, %v997_v13  ;;  %v2449_v19 = vor.u32 %v2809_v8, %v2448_v5 }
  0xd9   : > { %1788 = vmatpush.bf16.msrb.mxu3 %v2765_v20  ;;  %1762 = vmatpush.bf16.msrb.mxu1 %v2761_v27  ;;  %v2640_v20 = vld [vmem:[#allocation5 + $0x1c0] sm:$0xf]  ;;  %v2426_v27 = vld [vmem:[#allocation5 + $0x28] sm:$0xf0] }
  0xda   : > { %v2429_v37 = vor.u32 %v2800_v26, %v2426_v27  ;;  %v1634_v27 = vperm.slane %v3410_v62, 2 }
  0xdb   : > { %1750 = vmatpush.bf16.msrb.mxu0 %v2545_v28  ;;  %v2848_v28 = vld [vmem:[#allocation5 + $0x194] sm:$0xf] }
  0xdc   : > { %1776 = vmatpush.bf16.msrb.mxu2 %v2549_v15  ;;  %v2641_v15 = vor.u32 %v2857_v21, %v2640_v20  ;;  %v2621_v38 = vor.u32 %v2848_v28, %v2618_v29  ;;  %v1880_v29 = vld [vmem:[%s3470_s6] sm:$0x3] }
  0xdd   : > { %1789 = vmatpush.bf16.msrb.mxu3 %v2741_v31  ;;  %1763 = vmatpush.bf16.msrb.mxu1 %v2737_v39  ;;  %v1036_v31 = vpop.f32.mrf.mxu3  ;;  %v999_v39 = vpop.f32.mrf.mxu0 }
  0xde   : > { %v1037_v35 = vadd.f32 %v1036_v31, %v1023_v30  ;;  %v1025_v41 = vpop.f32.mrf.mxu2 }
  0xdf   : > { %1751 = vmatpush.bf16.msrb.mxu0 %v2521_v16  ;;  %v1012_v16 = vpop.f32.mrf.mxu1 }
  0xe0   : > { %1777 = vmatpush.bf16.msrb.mxu2 %v2525_v43 }
  0xe1   : > { %1790 = vmatpush.bf16.msrb.mxu3 %v2717_v44  ;;  %1764 = vmatpush.bf16.msrb.mxu1 %v2713_v51 }
  0xe3   : > { %1752 = vmatpush.bf16.msrb.mxu0 %v2497_v52 }
  0xe4   : > { %1778 = vmatpush.bf16.msrb.mxu2 %v2501_v55 }
  0xe5   : > { %1791 = vmatpush.bf16.msrb.mxu3 %v2693_v56  ;;  %1765 = vmatpush.bf16.msrb.mxu1 %v2689_v63  ;;  %v1038_v43 = vpop.f32.mrf.mxu3  ;;  %v1632_v63 = vperm.slane %v3410_v62, 0 }
  0xe7   : > { %1753 = vmatpush.bf16.msrb.mxu0 %v2473_v0 }
  0xe8   : > { %1779 = vmatpush.bf16.msrb.mxu2 %v2477_v3 }
  0xe9   : > { %1792 = vmatpush.bf16.msrb.mxu3 %v2669_v4  ;;  %1766 = vmatpush.bf16.msrb.mxu1 %v2665_v17  ;;  %v1633_v4 = vperm.slane %v3410_v62, 1 }
  0xeb   : > { %1754 = vmatpush.bf16.msrb.mxu0 %v2449_v19 }
  0xec   : > { %1780 = vmatpush.bf16.msrb.mxu2 %v2453_v22 }
  0xed   : > { %1793 = vmatpush.bf16.msrb.mxu3 %v2645_v23  ;;  %1767 = vmatpush.bf16.msrb.mxu1 %v2641_v15  ;;  %v1882_v15 = vperm.slane %v1880_v29, 0 }
  0xef   : > { %1755 = vmatpush.bf16.msrb.mxu0 %v2425_v32  ;;  %v1049_v44 = vpop.f32.mrf.mxu0 }
  0xf0   : > { %1781 = vmatpush.bf16.msrb.mxu2 %v2429_v37 }
  0xf1   : > { %1794 = vmatpush.bf16.msrb.mxu3 %v2621_v38  ;;  %1768 = vmatpush.bf16.msrb.mxu1 %v2617_v40  ;;  %v1635_v40 = vperm.slane %v3410_v62, 3 }
  0xf2   : > { %1756 = vmatmul.bf16.vlgmr.msrb.gmra.mxu0 %v3383_v36 }
  0xf3   : > { %1782 = vmatmul.bf16.vlgmr.msrb.gmra.mxu2 %v3383_v36  ;;  %v1062_v45 = vpop.f32.mrf.mxu1 }
  0xf4   : > { %1795 = vmatmul.bf16.vlgmr.msrb.gmra.mxu3 %v3385_v42  ;;  %1769 = vmatmul.bf16.vlgmr.msrb.gmra.mxu1 %v3385_v42  ;;  %v3401_v46 = vadd.f32 %v1062_v45, %v1049_v44 }
  0xf6   : > { %v1075_v47 = vpop.f32.mrf.mxu2 }
  0xf7   : > { %v1088_v48 = vpop.f32.mrf.mxu3  ;;  %v1051_v50 = vpop.f32.mrf.mxu0 }
  0xf8   : > { %v3403_v49 = vadd.f32 %v1088_v48, %v1075_v47  ;;  %v1883_v47 = vperm.slane %v1880_v29, 1 }
  0xfb   : > { %v1064_v51 = vpop.f32.mrf.mxu1 }
  0xfe   : > { %v1077_v52 = vpop.f32.mrf.mxu2 }
  0xff   : > { %v1090_v53 = vpop.f32.mrf.mxu3 }
 0x10f   : > { %v1101_v54 = vpop.f32.mrf.mxu0 }
 0x113   : > { %v1114_v55 = vpop.f32.mrf.mxu1 }
 0x114   : > { %v1115_v56 = vadd.f32 %v1114_v55, %v1101_v54 }
 0x116   : > { %v1127_v36 = vpop.f32.mrf.mxu2  ;;  %v1886_v43 = vadd.f32 %v1882_v15, %v1115_v56 }
 0x117   : > { %v1140_v57 = vpop.f32.mrf.mxu3  ;;  %v1103_v58 = vpop.f32.mrf.mxu0 }
 0x118   : > { %v3405_v59 = vadd.f32 %v1140_v57, %v1127_v36 }
 0x11b   : > { %v1116_v42 = vpop.f32.mrf.mxu1 }
 0x11e   : > { %v1129_v60 = vpop.f32.mrf.mxu2 }
 0x11f   : > { %v1142_v61 = vpop.f32.mrf.mxu3 }
 0x12f   : > { %v1653_v0 = vpop.f32.mrf.mxu0 }
 0x130   : > { %v1654_v1 = vadd.f32 %v1653_v0, %v1632_v63  ;;  %v1887_v63 = vadd.f32 %v1883_v47, %v3405_v59  ;;  %v1636_v59 = vperm.slane %v3410_v62, 4 }
 0x133   : > { %v1666_v2 = vpop.f32.mrf.mxu1 }
 0x134   : > { %v1667_v3 = vadd.f32 %v1666_v2, %v1654_v1 }
 0x136   : > { %v1800_v5 = vadd.f32 %v1667_v3, %v3395_v18  ;;  %v1679_v8 = vpop.f32.mrf.mxu2 }
 0x137   : > { %v1680_v10 = vadd.f32 %v1679_v8, %v1633_v4  ;;  %v1692_v11 = vpop.f32.mrf.mxu3  ;;  %v1655_v12 = vpop.f32.mrf.mxu0 }
 0x138   : > { %v2790_v9 = vmul.f32 -1.442695, %v1800_v5 }
 0x139   : > { %v1693_v13 = vadd.f32 %v1692_v11, %v1680_v10 }
 0x13a   : > { %3053 = vpow2.f32 %v2790_v9 }
 0x13b   : > { %v1668_v14 = vpop.f32.mrf.mxu1  ;;  %v1801_v17 = vadd.f32 %v1693_v13, %v1037_v35 }
 0x13d   : > { %v2791_v19 = vmul.f32 -1.442695, %v1801_v17 }
 0x13e   : > { %v1681_v20 = vpop.f32.mrf.mxu2 }
 0x13f   : > { %3055 = vpow2.f32 %v2791_v19  ;;  %v1694_v22 = vpop.f32.mrf.mxu3 }
 0x140   : > { %v3054_v21 = vpop.eup %3053 }
 0x141   : > { %v1808_v23 = vadd.f32 1.0, %v3054_v21 }
 0x143   : > { %3057 = vrcp.f32 %v1808_v23  ;;  %v1821_v30 = vand.u32 2147483648, %v1808_v23  ;;  %v1819_v33 = vand.u32 2147483647, %v1808_v23  ;;  %vm1815_vm2 = vweird.f32 %v1808_v23 }
 0x145   : > { %v3056_v24 = vpop.eup %3055  ;;  %v1822_v41 = vor.u32 1.1754944e-38, %v1821_v30  ;;  %vm1820_vm4 = vcmp.eq.f32.partialorder %v1819_v33, 8.507059e+37 }
 0x146   : > { %v1809_v25 = vadd.f32 1.0, %v3056_v24 }
 0x148   : > { %3059 = vrcp.f32 %v1809_v25  ;;  %v1836_v51 = vand.u32 2147483648, %v1809_v25  ;;  %v1834_v55 = vand.u32 2147483647, %v1809_v25  ;;  %vm1830_vm6 = vweird.f32 %v1809_v25 }
 0x149   : > { %v3058_v26 = vpop.eup %3057 }
 0x14a   : > { %v1811_v18 = vmul.f32 %v3058_v26, %v1808_v23  ;;  %vm1816_vm1 = vweird.f32 %v3058_v26  ;;  %v1837_v61 = vor.u32 1.1754944e-38, %v1836_v51  ;;  %vm1835_vm8 = vcmp.eq.f32.partialorder %v1834_v55, 8.507059e+37 }
 0x14b   : > { %vm1817_vm3 = vmor %vm1815_vm2, %vm1816_vm1  ;;  %vm1905_vm1 = vcmask 1040384  }
 0x14c   : > { %v1812_v28 = vsub.f32 1.0, %v1811_v18 }
 0x14e   : > { %v1813_v32 = vmul.f32 %v3058_v26, %v1812_v28  ;;  %v3060_v34 = vpop.eup %3059 }
 0x14f   : > { %v1705_v31 = vpop.f32.mrf.mxu0  ;;  %v1826_v39 = vmul.f32 %v3060_v34, %v1809_v25  ;;  %vm1831_vm5 = vweird.f32 %v3060_v34 }
 0x150   : > { %v1706_v35 = vadd.f32 %v1705_v31, %v1634_v27  ;;  %v1814_v38 = vadd.f32 %v3058_v26, %v1813_v32  ;;  %vm1832_vm7 = vmor %vm1830_vm6, %vm1831_vm5  ;;  %v1637_v27 = vperm.slane %v3410_v62, 5 }
 0x151   : > { %v1827_v45 = vsub.f32 1.0, %v1826_v39 }
 0x152   : > { %v1818_v44 = vsel %vm1817_vm3, %v3058_v26, %v1814_v38 }
 0x153   : > { %v1718_v37 = vpop.f32.mrf.mxu1  ;;  %v1823_v50 = vsel %vm1820_vm4, %v1822_v41, %v1818_v44  ;;  %v1828_v54 = vmul.f32 %v3060_v34, %v1827_v45 }
 0x154   : > { %v1719_v16 = vadd.f32 %v1718_v37, %v1706_v35  ;;  %v1888_v53 = vmul.f32 %v1886_v43, %v1823_v50 }
 0x155   : > { %v1829_v60 = vadd.f32 %v3060_v34, %v1828_v54 }
 0x156   : > { %v1840_v48 = vadd.f32 %v1719_v16, %v3401_v46  ;;  %v1731_v52 = vpop.f32.mrf.mxu2 }
 0x157   : > { %v1732_v57 = vadd.f32 %v1731_v52, %v1635_v40  ;;  %v1744_v58 = vpop.f32.mrf.mxu3  ;;  %v1707_v42 = vpop.f32.mrf.mxu0  ;;  %v1833_v0 = vsel %vm1832_vm7, %v3060_v34, %v1829_v60 }
 0x158   : > { %v2792_v36 = vmul.f32 -1.442695, %v1840_v48  ;;  %v1838_v2 = vsel %vm1835_vm8, %v1837_v61, %v1833_v0  ;;  %v1908_v42 = vlaneseq }
 0x159   : > { %v1745_v56 = vadd.f32 %v1744_v58, %v1732_v57  ;;  %v1889_v3 = vmul.f32 %v1887_v63, %v1838_v2 }
 0x15a   : > { %3061 = vpow2.f32 %v2792_v36  ;;  %vm1910_vm2 = vcmp.lt.s32.totalorder %v1908_v42, 256 }
 0x15b   : > { %v1720_v46 = vpop.f32.mrf.mxu1  ;;  %v1841_v1 = vadd.f32 %v1745_v56, %v3403_v49 }
 0x15d   : > { %v2793_v4 = vmul.f32 -1.442695, %v1841_v1 }
 0x15e   : > { %v1733_v5 = vpop.f32.mrf.mxu2 }
 0x15f   : > { %3063 = vpow2.f32 %v2793_v4  ;;  %v1746_v9 = vpop.f32.mrf.mxu3 }
 0x160   : > { %v3062_v8 = vpop.eup %3061 }
 0x161   : > { %v1848_v10 = vadd.f32 1.0, %v3062_v8 }
 0x163   : > { %3065 = vrcp.f32 %v1848_v10  ;;  %v1861_v25 = vand.u32 2147483648, %v1848_v10  ;;  %vm1855_vm10 = vweird.f32 %v1848_v10  ;;  %v1859_v28 = vand.u32 2147483647, %v1848_v10 }
 0x165   : > { %v3064_v11 = vpop.eup %3063  ;;  %v1862_v33 = vor.u32 1.1754944e-38, %v1861_v25  ;;  %vm1860_vm12 = vcmp.eq.f32.partialorder %v1859_v28, 8.507059e+37 }
 0x166   : > { %v1849_v12 = vadd.f32 1.0, %v3064_v11 }
 0x168   : > { %3067 = vrcp.f32 %v1849_v12  ;;  %v1876_v38 = vand.u32 2147483648, %v1849_v12  ;;  %vm1870_vm14 = vweird.f32 %v1849_v12  ;;  %v1874_v62 = vand.u32 2147483647, %v1849_v12 }
 0x169   : > { %v3066_v13 = vpop.eup %3065 }
 0x16a   : > { %v1851_v14 = vmul.f32 %v3066_v13, %v1848_v10  ;;  %vm1856_vm9 = vweird.f32 %v3066_v13  ;;  %v1877_v47 = vor.u32 1.1754944e-38, %v1876_v38  ;;  %vm1875_vm0 = vcmp.eq.f32.partialorder %v1874_v62, 8.507059e+37 }
 0x16b   : > { %vm1857_vm11 = vmor %vm1855_vm10, %vm1856_vm9 }
 0x16c   : > { %v1852_v17 = vsub.f32 1.0, %v1851_v14 }
 0x16e   : > { %v1853_v19 = vmul.f32 %v3066_v13, %v1852_v17  ;;  %v3068_v49 = vpop.eup %3067 }
 0x16f   : > { %v1757_v20 = vpop.f32.mrf.mxu0  ;;  %v1866_v22 = vmul.f32 %v3068_v49, %v1849_v12  ;;  %vm1871_vm13 = vweird.f32 %v3068_v49 }
 0x170   : > { %v1758_v21 = vadd.f32 %v1757_v20, %v1636_v59  ;;  %v1854_v24 = vadd.f32 %v3066_v13, %v1853_v19  ;;  %vm1872_vm15 = vmor %vm1870_vm14, %vm1871_vm13 }
 0x171   : > { %v1770_v23 = vpop.f32.mrf.mxu1  ;;  %v1867_v26 = vsub.f32 1.0, %v1866_v22 }
 0x172   : > { %v1771_v18 = vadd.f32 %v1770_v23, %v1758_v21  ;;  %v1858_v15 = vsel %vm1857_vm11, %v3066_v13, %v1854_v24 }
 0x173   : > { %v1868_v29 = vmul.f32 %v3068_v49, %v1867_v26  ;;  %v1863_v39 = vsel %vm1860_vm12, %v1862_v33, %v1858_v15 }
 0x174   : > { %v1890_v30 = vadd.f32 %v1888_v53, %v1771_v18  ;;  %v1894_v43 = vsub.f32 1.0, %v1863_v39  ;;  %v1898_v52 = vmul.f32 %v1863_v39, %v3358_v6 }
 0x175   : > { %v1869_v37 = vadd.f32 %v3068_v49, %v1868_v29 }
 0x176   : > { %v1783_v31 = vpop.f32.mrf.mxu2  ;;  %3069 = vtanh.f32 %v1890_v30 }
 0x177   : > { %v1796_v32 = vpop.f32.mrf.mxu3  ;;  %v1784_v34 = vadd.f32 %v1783_v31, %v1637_v27  ;;  %v1759_v35 = vpop.f32.mrf.mxu0  ;;  %v1873_v44 = vsel %vm1872_vm15, %v3068_v49, %v1869_v37 }
 0x178   : > { %v1878_v53 = vsel %vm1875_vm0, %v1877_v47, %v1873_v44 }
 0x179   : > { %v1797_v16 = vadd.f32 %v1796_v32, %v1784_v34  ;;  %v1772_v40 = vpop.f32.mrf.mxu1  ;;  %v1895_v55 = vsub.f32 1.0, %v1878_v53  ;;  %v1899_v58 = vmul.f32 %v1878_v53, %v3360_v7 }
 0x17b   : > { %v1891_v41 = vadd.f32 %v1889_v3, %v1797_v16 }
 0x17c   : > { %v3070_v45 = vpop.eup %3069 }
 0x17d   : > { %3071 = vtanh.f32 %v1891_v41  ;;  %v1896_v48 = vmul.f32 %v3070_v45, %v1894_v43 }
 0x17e   : > { %v1785_v50 = vpop.f32.mrf.mxu2 }
 0x17f   : > { %v1798_v51 = vpop.f32.mrf.mxu3  ;;  %v1900_v54 = vadd.f32 %v1898_v52, %v1896_v48 }
 0x183   : > { %v3072_v36 = vpop.eup %3071 }
 0x184   : > { %v1897_v57 = vmul.f32 %v3072_v36, %v1895_v55 }
 0x186   : > { %v1901_v60 = vadd.f32 %v1899_v58, %v1897_v57 }
 0x188   : > { %v1904_v6 = vrot.slane %v1901_v60, 7 }
 0x18a   : > { %v1906_v56 = vsel %vm1905_vm1, %v1900_v54, %v1904_v6 }
 0x18b   : > { %1912 = vst.msk [vmem:[#allocation2] sm:$0x3] %vm1910_vm2, %v1906_v56 }
 0x18c   : > { %1913 = vst.msk [vmem:[%s290_s21] sm:$0x3] %vm1910_vm2, %v1906_v56 }
 0x18d   : > { %3172 = shalt.err (!%p3169_p9)
}
 0x18e   : > { %2998 = dma.vmem_to_hbm [thread:$0]  (%p3305_p5), %s1928_s19, 32, %s1930_s20, %s1915_s0  }
 0x18f PF: > { %p3015_p10 = scmp.ge.s32.totalorder %s3217_s8, 2  ;;  %s1941_s11 = sand.u32 1, %s3205_s28  }
 0x190   : > { %s1942_s16 = scalar_lea.sflag [#allocation7], %s1941_s11 }
 0x191   : > { %p3008_p11 = pnand %p3015_p10, %p3309_p6 }
 0x193   : > { %p3009_p12 = pneg %p3008_p11 }
 0x195   : > { %3200 = dma.done.wait (%p3009_p12), %s1942_s16, 32  }
 0x196   : > { %3202 = vsyncadd (%p3009_p12), %s1942_s16, 4294967264  ;;  %p27_p13 = scmp.ge.s32.totalorder %s3292_s10, 10   ;;  %s3475_s28 = smov %s3209_s29 }
 0x197   : > { %s3476_s29 = smov %s3213_s30  ;;  %s3477_s30 = smov %s3303_s13 }
 0x198   : > { %s3478_s8 = smov %s3292_s10  ;;  %29 = sbr.rel (!%p27_p13) target bundleno = 11 (0xb), region = 92 }
 0x19d   :  { %1948 = vsyncpa [#allocation6], 1 }
 0x19e   :  { %1950 = vsyncpa [#allocation6 + $0x1], 1 }
 0x19f   :  { %1951 = vsyncpa [#allocation9], 1 }
 0x1a0   :  { %1952 = vsyncpa [#allocation7], 1 }
 0x1a1   :  { %1954 = vsyncpa [#allocation7 + $0x1], 1 }

</bundles_post_ra>
